<compile_context>
chip_gen: v7x
topology: tpu7x:2x2x1
jax: 0.10.0
libtpu: 0.0.40
codegen_flags: <defaults>
</compile_context>

<pallas_src>
import functools

import jax
import jax.numpy as jnp
from jax.experimental import pallas as pl
from jax.experimental.pallas import tpu as pltpu

_SUBLANE = 8
_LANE = 128


# ---------------------------------------------------------------------------
# Fused kernel: stacked LSTM (skew-interleaved) + collapsed FC head.
# PyTorch gate ordering along the 4*H axis: [i, f, g, o]; b = b_ih + b_hh;
# zero-initialized (h, c).
# ---------------------------------------------------------------------------
def _network_kernel(*refs, T, Bp, D, H, n_lstm):
    # refs layout:
    #   inputs : x2d (T*Bp, D)
    #            layer 0   : wx0 (D,4H), wh0 (H,4H), b0 (1,4H)
    #            layer l>=1: wcat_l (2H,4H), b_l (1,4H)
    #            fc head   : w_comb (H,_LANE), b_comb (1,_LANE)
    #   outputs: y (T*Bp, _LANE)
    idx = 0
    x_ref = refs[idx]; idx += 1
    wx0_ref, wh0_ref, b0_ref = refs[idx], refs[idx + 1], refs[idx + 2]
    idx += 3
    upper = []
    for _ in range(n_lstm - 1):
        upper.append((refs[idx], refs[idx + 1]))
        idx += 2
    wfc_ref, bfc_ref = refs[idx], refs[idx + 1]
    idx += 2
    y_ref = refs[idx]

    f32 = jnp.float32

    # Hoisted layer-0 input projection for all T timesteps at once (one MXU
    # matmul, off the serial recurrence critical path).
    proj0 = jnp.dot(x_ref[...], wx0_ref[...],
                    preferred_element_type=f32) + b0_ref[...]     # (T*Bp, 4H)

    wh0 = wh0_ref[...]                                            # (H, 4H)
    wcat = [w_ref[...] for (w_ref, _) in upper]                   # (2H, 4H)
    bup = [b_ref[...] for (_, b_ref) in upper]                    # (1, 4H)

    h = [jnp.zeros((Bp, H), f32) for _ in range(n_lstm)]
    c = [jnp.zeros((Bp, H), f32) for _ in range(n_lstm)]
    outs = [[None] * T for _ in range(n_lstm)]

    def cell(gates, c_prev):
        # Two full-tile (Bp, 4H) EUP calls instead of 4 narrow 32-lane calls.
        sig = jax.nn.sigmoid(gates)
        th = jnp.tanh(gates)
        i_g = sig[:, 0 * H:1 * H]
        f_g = sig[:, 1 * H:2 * H]
        g_g = th[:, 2 * H:3 * H]
        o_g = sig[:, 3 * H:4 * H]
        c_new = f_g * c_prev + i_g * g_g
        h_new = o_g * jnp.tanh(c_new)
        return h_new, c_new

    # Skewed schedule: iteration s runs layer l at timestep t = s - l, so the
    # per-iteration chains of different layers are data-independent and can
    # pipeline. Fully unrolled (T, n_lstm static and small).
    for s in range(T + n_lstm - 1):
        for l in range(n_lstm):
            t = s - l
            if t < 0 or t >= T:
                continue
            if l == 0:
                gates = proj0[t * Bp:(t + 1) * Bp, :] + jnp.dot(
                    h[0], wh0, preferred_element_type=f32)
            else:
                # One MXU push on the concatenated [h_below_t, h_this_{t-1}].
                inp = jnp.concatenate([outs[l - 1][t], h[l]], axis=1)
                gates = jnp.dot(inp, wcat[l - 1],
                                preferred_element_type=f32) + bup[l - 1]
            h[l], c[l] = cell(gates, c[l])
            outs[l][t] = h[l]

    # Collapsed FC head (fc1..fc7 folded in the wrapper): one matmul with a
    # lane-padded output so the final store is unmasked.
    seq_top = jnp.concatenate(outs[-1], axis=0)                   # (T*Bp, H)
    y = jnp.dot(seq_top, wfc_ref[...],
                preferred_element_type=f32) + bfc_ref[...]        # (T*Bp, 128)
    y_ref[...] = y.astype(y_ref.dtype)


# ---------------------------------------------------------------------------
# Full forward pass mirroring Network.forward — single fused pallas_call.
# x: (seq_len, batch, n_prev) float32, batch_first=False like nn.LSTM default.
# Returns (seq_len, batch, 1).
# ---------------------------------------------------------------------------
@jax.jit
def network_forward(x, params):
    T, B, D = x.shape
    H = params["lstm"][0][1].shape[0]
    n_lstm = len(params["lstm"])

    # Pad batch up to a full sublane group so per-timestep slices in the
    # kernel are 8-row aligned. LSTM rows are independent; padding sliced off.
    Bp = max(_SUBLANE, ((B + _SUBLANE - 1) // _SUBLANE) * _SUBLANE)
    x_pad = jnp.zeros((T, Bp, D), jnp.float32).at[:, :B, :].set(
        x.astype(jnp.float32))
    x2d = x_pad.reshape(T * Bp, D)

    # Fold the activation-free fc1..fc7 stack into one affine map (exact).
    w_comb, b_comb = params["fc"][0]
    for (w, b) in params["fc"][1:]:
        b_comb = b_comb @ w + b
        w_comb = w_comb @ w
    # Lane-pad the 1-wide head so the kernel writes an unmasked (.,128) slab.
    w_comb = jnp.pad(w_comb, ((0, 0), (0, _LANE - w_comb.shape[1])))
    b_comb = jnp.pad(b_comb, ((0, 0), (0, _LANE - b_comb.shape[1])))

    flat_inputs = [x2d]
    wx0, wh0, b0 = params["lstm"][0]
    flat_inputs += [wx0, wh0, b0]
    for (wx, wh, b) in params["lstm"][1:]:
        # Upper layers consume on-the-fly inputs: fuse [Wx; Wh] vertically so
        # each step is a single matmul on the concatenated hidden pair.
        flat_inputs += [jnp.concatenate([wx, wh], axis=0), b]
    flat_inputs += [w_comb, b_comb]

    # Advisory cost estimate so XLA schedules sanely around the custom call.
    flops = 2 * (T * Bp) * D * 4 * H                    # hoisted projection
    flops += 2 * T * Bp * H * 4 * H                     # layer-0 recurrence
    flops += (n_lstm - 1) * 2 * T * Bp * (2 * H) * 4 * H
    flops += n_lstm * 12 * T * Bp * H                   # gate elementwise
    flops += 2 * (T * Bp) * H * _LANE                   # collapsed FC head
    transcendentals = n_lstm * T * (2 * Bp * 4 * H + Bp * H)
    bytes_accessed = sum(int(a.size) * 4 for a in flat_inputs) + T * Bp * _LANE * 4

    kernel = functools.partial(
        _network_kernel, T=T, Bp=Bp, D=D, H=H, n_lstm=n_lstm)

    out = pl.pallas_call(
        kernel,
        out_shape=jax.ShapeDtypeStruct((T * Bp, _LANE), jnp.float32),
        in_specs=[pl.BlockSpec(memory_space=pltpu.MemorySpace.VMEM)
                  for _ in flat_inputs],
        out_specs=pl.BlockSpec(memory_space=pltpu.MemorySpace.VMEM),
        cost_estimate=pl.CostEstimate(
            flops=int(flops),
            transcendentals=int(transcendentals),
            bytes_accessed=int(bytes_accessed)),
    )(*flat_inputs)

    return out.reshape(T, Bp, _LANE)[:, :B, 0:1]        # (seq_len, B, 1)


# ---------------------------------------------------------------------------
# Parameter construction (deterministic, synthetic) matching the torch module.
# ---------------------------------------------------------------------------
def init_params(key, n_prev, h0, c0):
    fc_dims = [(h0, 300), (300, 250), (250, 150), (150, 100),
               (100, 50), (50, 20), (20, 1)]
    params = {"lstm": [], "fc": []}
    for layer in range(c0):
        d_in = n_prev if layer == 0 else h0
        key, k1, k2, k3, k4 = jax.random.split(key, 5)
        scale = 1.0 / jnp.sqrt(h0)
        wx = jax.random.uniform(k1, (d_in, 4 * h0), jnp.float32, -scale, scale)
        wh = jax.random.uniform(k2, (h0, 4 * h0), jnp.float32, -scale, scale)
        b_ih = jax.random.uniform(k3, (1, 4 * h0), jnp.float32, -scale, scale)
        b_hh = jax.random.uniform(k4, (1, 4 * h0), jnp.float32, -scale, scale)
        params["lstm"].append((wx, wh, b_ih + b_hh))
    for d_in, d_out in fc_dims:
        key, k1, k2 = jax.random.split(key, 3)
        scale = 1.0 / jnp.sqrt(d_in)
        w = jax.random.uniform(k1, (d_in, d_out), jnp.float32, -scale, scale)
        b = jax.random.uniform(k2, (1, d_out), jnp.float32, -scale, scale)
        params["fc"].append((w, b))
    return params


# ---------------------------------------------------------------------------
# Pure-JAX reference (un-collapsed FC stack, unpadded) for correctness check.
# ---------------------------------------------------------------------------
def _reference_forward(x, params):
    T, B, _ = x.shape
    h_seq = x
    for (wx, wh, b) in params["lstm"]:
        H = wh.shape[0]
        h = jnp.zeros((B, H), jnp.float32)
        c = jnp.zeros((B, H), jnp.float32)
        outs = []
        for t in range(T):
            gates = h_seq[t] @ wx + h @ wh + b
            i_g = jax.nn.sigmoid(gates[:, 0 * H:1 * H])
            f_g = jax.nn.sigmoid(gates[:, 1 * H:2 * H])
            g_g = jnp.tanh(gates[:, 2 * H:3 * H])
            o_g = jax.nn.sigmoid(gates[:, 3 * H:4 * H])
            c = f_g * c + i_g * g_g
            h = o_g * jnp.tanh(c)
            outs.append(h)
        h_seq = jnp.stack(outs, axis=0)
    out = h_seq
    for (w, b) in params["fc"]:
        out = out @ w + b
    return out


if __name__ == "__main__":
    # Shapes consistent with the module: LSTM(n_prev, h0, num_layers=c0)
    n_prev, h0, c0 = 8, 32, 2
    seq_len, batch = 8, 2

    key = jax.random.PRNGKey(0)
    key, kx = jax.random.split(key)
    x = jax.random.normal(kx, (seq_len, batch, n_prev), dtype=jnp.float32)
    params = init_params(key, n_prev, h0, c0)

    predict = network_forward(x, params)
    jax.block_until_ready(predict)
    assert predict.shape == (seq_len, batch, 1)

    ref = _reference_forward(x, params)
    max_err = float(jnp.max(jnp.abs(predict - ref)))
    assert jnp.allclose(predict, ref, rtol=1e-3, atol=1e-3), max_err

    print("KERNEL_OK")
</pallas_src>

<mosaic_0001>
module attributes {stable_mosaic.version = 11 : i64} {
  func.func @_network_kernel(%arg0: memref<64x8xf32, #tpu.memory_space<vmem>>, %arg1: memref<8x128xf32, #tpu.memory_space<vmem>>, %arg2: memref<32x128xf32, #tpu.memory_space<vmem>>, %arg3: memref<1x128xf32, #tpu.memory_space<vmem>>, %arg4: memref<64x128xf32, #tpu.memory_space<vmem>>, %arg5: memref<1x128xf32, #tpu.memory_space<vmem>>, %arg6: memref<32x128xf32, #tpu.memory_space<vmem>>, %arg7: memref<1x128xf32, #tpu.memory_space<vmem>>, %arg8: memref<64x128xf32, #tpu.memory_space<vmem>>) attributes {dimension_semantics = [], scalar_prefetch = 0 : i64, scratch_operands = 0 : i64, tpu.core_type = #tpu.core_type<tc>} {
    %c0 = arith.constant 0 : index
    %c0_0 = arith.constant 0 : index
    %0 = vector.load %arg0[%c0, %c0_0] : memref<64x8xf32, #tpu.memory_space<vmem>>, vector<64x8xf32>
    %c0_1 = arith.constant 0 : index
    %c0_2 = arith.constant 0 : index
    %1 = vector.load %arg1[%c0_1, %c0_2] : memref<8x128xf32, #tpu.memory_space<vmem>>, vector<8x128xf32>
    %cst = arith.constant dense<0.000000e+00> : vector<64x128xf32>
    %2 = tpu.matmul %0, %1, %cst {dimension_numbers = #tpu.dot_dimension_numbers<[1], [0], [0], [1], [0, 0, 1, 1], [], []>} : vector<64x8xf32>, vector<8x128xf32>, vector<64x128xf32> -> vector<64x128xf32>
    %c0_3 = arith.constant 0 : index
    %c0_4 = arith.constant 0 : index
    %3 = vector.load %arg3[%c0_3, %c0_4] : memref<1x128xf32, #tpu.memory_space<vmem>>, vector<1x128xf32>
    %4 = vector.broadcast %3 : vector<1x128xf32> to vector<64x128xf32>
    %5 = arith.addf %2, %4 : vector<64x128xf32>
    %c0_5 = arith.constant 0 : index
    %c0_6 = arith.constant 0 : index
    %6 = vector.load %arg2[%c0_5, %c0_6] : memref<32x128xf32, #tpu.memory_space<vmem>>, vector<32x128xf32>
    %c0_7 = arith.constant 0 : index
    %c0_8 = arith.constant 0 : index
    %7 = vector.load %arg4[%c0_7, %c0_8] : memref<64x128xf32, #tpu.memory_space<vmem>>, vector<64x128xf32>
    %c0_9 = arith.constant 0 : index
    %c0_10 = arith.constant 0 : index
    %8 = vector.load %arg5[%c0_9, %c0_10] : memref<1x128xf32, #tpu.memory_space<vmem>>, vector<1x128xf32>
    %cst_11 = arith.constant 0.000000e+00 : f32
    %9 = vector.broadcast %cst_11 : f32 to vector<8x32xf32>
    %cst_12 = arith.constant 0.000000e+00 : f32
    %10 = vector.broadcast %cst_12 : f32 to vector<8x32xf32>
    %cst_13 = arith.constant 0.000000e+00 : f32
    %11 = vector.broadcast %cst_13 : f32 to vector<8x32xf32>
    %cst_14 = arith.constant 0.000000e+00 : f32
    %12 = vector.broadcast %cst_14 : f32 to vector<8x32xf32>
    %13 = vector.extract_strided_slice %5 {offsets = [0, 0], sizes = [8, 128], strides = [1, 1]} : vector<64x128xf32> to vector<8x128xf32>
    %cst_15 = arith.constant dense<0.000000e+00> : vector<8x128xf32>
    %14 = tpu.matmul %9, %6, %cst_15 {dimension_numbers = #tpu.dot_dimension_numbers<[1], [0], [0], [1], [0, 0, 1, 1], [], []>} : vector<8x32xf32>, vector<32x128xf32>, vector<8x128xf32> -> vector<8x128xf32>
    %15 = arith.addf %13, %14 : vector<8x128xf32>
    %16 = arith.negf %15 : vector<8x128xf32>
    %17 = math.exp %16 : vector<8x128xf32>
    %cst_16 = arith.constant 1.000000e+00 : f32
    %18 = vector.broadcast %cst_16 : f32 to vector<8x128xf32>
    %19 = arith.addf %18, %17 : vector<8x128xf32>
    %20 = arith.divf %18, %19 : vector<8x128xf32>
    %21 = math.tanh %15 : vector<8x128xf32>
    %22 = vector.extract_strided_slice %20 {offsets = [0, 0], sizes = [8, 32], strides = [1, 1]} : vector<8x128xf32> to vector<8x32xf32>
    %23 = vector.extract_strided_slice %20 {offsets = [0, 32], sizes = [8, 32], strides = [1, 1]} : vector<8x128xf32> to vector<8x32xf32>
    %24 = vector.extract_strided_slice %21 {offsets = [0, 64], sizes = [8, 32], strides = [1, 1]} : vector<8x128xf32> to vector<8x32xf32>
    %25 = vector.extract_strided_slice %20 {offsets = [0, 96], sizes = [8, 32], strides = [1, 1]} : vector<8x128xf32> to vector<8x32xf32>
    %26 = arith.mulf %23, %11 : vector<8x32xf32>
    %27 = arith.mulf %22, %24 : vector<8x32xf32>
    %28 = arith.addf %26, %27 : vector<8x32xf32>
    %29 = math.tanh %28 : vector<8x32xf32>
    %30 = arith.mulf %25, %29 : vector<8x32xf32>
    %31 = vector.extract_strided_slice %5 {offsets = [8, 0], sizes = [8, 128], strides = [1, 1]} : vector<64x128xf32> to vector<8x128xf32>
    %cst_17 = arith.constant dense<0.000000e+00> : vector<8x128xf32>
    %32 = tpu.matmul %30, %6, %cst_17 {dimension_numbers = #tpu.dot_dimension_numbers<[1], [0], [0], [1], [0, 0, 1, 1], [], []>} : vector<8x32xf32>, vector<32x128xf32>, vector<8x128xf32> -> vector<8x128xf32>
    %33 = arith.addf %31, %32 : vector<8x128xf32>
    %34 = arith.negf %33 : vector<8x128xf32>
    %35 = math.exp %34 : vector<8x128xf32>
    %cst_18 = arith.constant 1.000000e+00 : f32
    %36 = vector.broadcast %cst_18 : f32 to vector<8x128xf32>
    %37 = arith.addf %36, %35 : vector<8x128xf32>
    %38 = arith.divf %36, %37 : vector<8x128xf32>
    %39 = math.tanh %33 : vector<8x128xf32>
    %40 = vector.extract_strided_slice %38 {offsets = [0, 0], sizes = [8, 32], strides = [1, 1]} : vector<8x128xf32> to vector<8x32xf32>
    %41 = vector.extract_strided_slice %38 {offsets = [0, 32], sizes = [8, 32], strides = [1, 1]} : vector<8x128xf32> to vector<8x32xf32>
    %42 = vector.extract_strided_slice %39 {offsets = [0, 64], sizes = [8, 32], strides = [1, 1]} : vector<8x128xf32> to vector<8x32xf32>
    %43 = vector.extract_strided_slice %38 {offsets = [0, 96], sizes = [8, 32], strides = [1, 1]} : vector<8x128xf32> to vector<8x32xf32>
    %44 = arith.mulf %41, %28 : vector<8x32xf32>
    %45 = arith.mulf %40, %42 : vector<8x32xf32>
    %46 = arith.addf %44, %45 : vector<8x32xf32>
    %47 = math.tanh %46 : vector<8x32xf32>
    %48 = arith.mulf %43, %47 : vector<8x32xf32>
    %49 = tpu.concatenate %30, %10 in 1 : vector<8x32xf32>, vector<8x32xf32> -> vector<8x64xf32>
    %cst_19 = arith.constant dense<0.000000e+00> : vector<8x128xf32>
    %50 = tpu.matmul %49, %7, %cst_19 {dimension_numbers = #tpu.dot_dimension_numbers<[1], [0], [0], [1], [0, 0, 1, 1], [], []>} : vector<8x64xf32>, vector<64x128xf32>, vector<8x128xf32> -> vector<8x128xf32>
    %51 = vector.broadcast %8 : vector<1x128xf32> to vector<8x128xf32>
    %52 = arith.addf %50, %51 : vector<8x128xf32>
    %53 = arith.negf %52 : vector<8x128xf32>
    %54 = math.exp %53 : vector<8x128xf32>
    %cst_20 = arith.constant 1.000000e+00 : f32
    %55 = vector.broadcast %cst_20 : f32 to vector<8x128xf32>
    %56 = arith.addf %55, %54 : vector<8x128xf32>
    %57 = arith.divf %55, %56 : vector<8x128xf32>
    %58 = math.tanh %52 : vector<8x128xf32>
    %59 = vector.extract_strided_slice %57 {offsets = [0, 0], sizes = [8, 32], strides = [1, 1]} : vector<8x128xf32> to vector<8x32xf32>
    %60 = vector.extract_strided_slice %57 {offsets = [0, 32], sizes = [8, 32], strides = [1, 1]} : vector<8x128xf32> to vector<8x32xf32>
    %61 = vector.extract_strided_slice %58 {offsets = [0, 64], sizes = [8, 32], strides = [1, 1]} : vector<8x128xf32> to vector<8x32xf32>
    %62 = vector.extract_strided_slice %57 {offsets = [0, 96], sizes = [8, 32], strides = [1, 1]} : vector<8x128xf32> to vector<8x32xf32>
    %63 = arith.mulf %60, %12 : vector<8x32xf32>
    %64 = arith.mulf %59, %61 : vector<8x32xf32>
    %65 = arith.addf %63, %64 : vector<8x32xf32>
    %66 = math.tanh %65 : vector<8x32xf32>
    %67 = arith.mulf %62, %66 : vector<8x32xf32>
    %68 = vector.extract_strided_slice %5 {offsets = [16, 0], sizes = [8, 128], strides = [1, 1]} : vector<64x128xf32> to vector<8x128xf32>
    %cst_21 = arith.constant dense<0.000000e+00> : vector<8x128xf32>
    %69 = tpu.matmul %48, %6, %cst_21 {dimension_numbers = #tpu.dot_dimension_numbers<[1], [0], [0], [1], [0, 0, 1, 1], [], []>} : vector<8x32xf32>, vector<32x128xf32>, vector<8x128xf32> -> vector<8x128xf32>
    %70 = arith.addf %68, %69 : vector<8x128xf32>
    %71 = arith.negf %70 : vector<8x128xf32>
    %72 = math.exp %71 : vector<8x128xf32>
    %cst_22 = arith.constant 1.000000e+00 : f32
    %73 = vector.broadcast %cst_22 : f32 to vector<8x128xf32>
    %74 = arith.addf %73, %72 : vector<8x128xf32>
    %75 = arith.divf %73, %74 : vector<8x128xf32>
    %76 = math.tanh %70 : vector<8x128xf32>
    %77 = vector.extract_strided_slice %75 {offsets = [0, 0], sizes = [8, 32], strides = [1, 1]} : vector<8x128xf32> to vector<8x32xf32>
    %78 = vector.extract_strided_slice %75 {offsets = [0, 32], sizes = [8, 32], strides = [1, 1]} : vector<8x128xf32> to vector<8x32xf32>
    %79 = vector.extract_strided_slice %76 {offsets = [0, 64], sizes = [8, 32], strides = [1, 1]} : vector<8x128xf32> to vector<8x32xf32>
    %80 = vector.extract_strided_slice %75 {offsets = [0, 96], sizes = [8, 32], strides = [1, 1]} : vector<8x128xf32> to vector<8x32xf32>
    %81 = arith.mulf %78, %46 : vector<8x32xf32>
    %82 = arith.mulf %77, %79 : vector<8x32xf32>
    %83 = arith.addf %81, %82 : vector<8x32xf32>
    %84 = math.tanh %83 : vector<8x32xf32>
    %85 = arith.mulf %80, %84 : vector<8x32xf32>
    %86 = tpu.concatenate %48, %67 in 1 : vector<8x32xf32>, vector<8x32xf32> -> vector<8x64xf32>
    %cst_23 = arith.constant dense<0.000000e+00> : vector<8x128xf32>
    %87 = tpu.matmul %86, %7, %cst_23 {dimension_numbers = #tpu.dot_dimension_numbers<[1], [0], [0], [1], [0, 0, 1, 1], [], []>} : vector<8x64xf32>, vector<64x128xf32>, vector<8x128xf32> -> vector<8x128xf32>
    %88 = vector.broadcast %8 : vector<1x128xf32> to vector<8x128xf32>
    %89 = arith.addf %87, %88 : vector<8x128xf32>
    %90 = arith.negf %89 : vector<8x128xf32>
    %91 = math.exp %90 : vector<8x128xf32>
    %cst_24 = arith.constant 1.000000e+00 : f32
    %92 = vector.broadcast %cst_24 : f32 to vector<8x128xf32>
    %93 = arith.addf %92, %91 : vector<8x128xf32>
    %94 = arith.divf %92, %93 : vector<8x128xf32>
    %95 = math.tanh %89 : vector<8x128xf32>
    %96 = vector.extract_strided_slice %94 {offsets = [0, 0], sizes = [8, 32], strides = [1, 1]} : vector<8x128xf32> to vector<8x32xf32>
    %97 = vector.extract_strided_slice %94 {offsets = [0, 32], sizes = [8, 32], strides = [1, 1]} : vector<8x128xf32> to vector<8x32xf32>
    %98 = vector.extract_strided_slice %95 {offsets = [0, 64], sizes = [8, 32], strides = [1, 1]} : vector<8x128xf32> to vector<8x32xf32>
    %99 = vector.extract_strided_slice %94 {offsets = [0, 96], sizes = [8, 32], strides = [1, 1]} : vector<8x128xf32> to vector<8x32xf32>
    %100 = arith.mulf %97, %65 : vector<8x32xf32>
    %101 = arith.mulf %96, %98 : vector<8x32xf32>
    %102 = arith.addf %100, %101 : vector<8x32xf32>
    %103 = math.tanh %102 : vector<8x32xf32>
    %104 = arith.mulf %99, %103 : vector<8x32xf32>
    %105 = vector.extract_strided_slice %5 {offsets = [24, 0], sizes = [8, 128], strides = [1, 1]} : vector<64x128xf32> to vector<8x128xf32>
    %cst_25 = arith.constant dense<0.000000e+00> : vector<8x128xf32>
    %106 = tpu.matmul %85, %6, %cst_25 {dimension_numbers = #tpu.dot_dimension_numbers<[1], [0], [0], [1], [0, 0, 1, 1], [], []>} : vector<8x32xf32>, vector<32x128xf32>, vector<8x128xf32> -> vector<8x128xf32>
    %107 = arith.addf %105, %106 : vector<8x128xf32>
    %108 = arith.negf %107 : vector<8x128xf32>
    %109 = math.exp %108 : vector<8x128xf32>
    %cst_26 = arith.constant 1.000000e+00 : f32
    %110 = vector.broadcast %cst_26 : f32 to vector<8x128xf32>
    %111 = arith.addf %110, %109 : vector<8x128xf32>
    %112 = arith.divf %110, %111 : vector<8x128xf32>
    %113 = math.tanh %107 : vector<8x128xf32>
    %114 = vector.extract_strided_slice %112 {offsets = [0, 0], sizes = [8, 32], strides = [1, 1]} : vector<8x128xf32> to vector<8x32xf32>
    %115 = vector.extract_strided_slice %112 {offsets = [0, 32], sizes = [8, 32], strides = [1, 1]} : vector<8x128xf32> to vector<8x32xf32>
    %116 = vector.extract_strided_slice %113 {offsets = [0, 64], sizes = [8, 32], strides = [1, 1]} : vector<8x128xf32> to vector<8x32xf32>
    %117 = vector.extract_strided_slice %112 {offsets = [0, 96], sizes = [8, 32], strides = [1, 1]} : vector<8x128xf32> to vector<8x32xf32>
    %118 = arith.mulf %115, %83 : vector<8x32xf32>
    %119 = arith.mulf %114, %116 : vector<8x32xf32>
    %120 = arith.addf %118, %119 : vector<8x32xf32>
    %121 = math.tanh %120 : vector<8x32xf32>
    %122 = arith.mulf %117, %121 : vector<8x32xf32>
    %123 = tpu.concatenate %85, %104 in 1 : vector<8x32xf32>, vector<8x32xf32> -> vector<8x64xf32>
    %cst_27 = arith.constant dense<0.000000e+00> : vector<8x128xf32>
    %124 = tpu.matmul %123, %7, %cst_27 {dimension_numbers = #tpu.dot_dimension_numbers<[1], [0], [0], [1], [0, 0, 1, 1], [], []>} : vector<8x64xf32>, vector<64x128xf32>, vector<8x128xf32> -> vector<8x128xf32>
    %125 = vector.broadcast %8 : vector<1x128xf32> to vector<8x128xf32>
    %126 = arith.addf %124, %125 : vector<8x128xf32>
    %127 = arith.negf %126 : vector<8x128xf32>
    %128 = math.exp %127 : vector<8x128xf32>
    %cst_28 = arith.constant 1.000000e+00 : f32
    %129 = vector.broadcast %cst_28 : f32 to vector<8x128xf32>
    %130 = arith.addf %129, %128 : vector<8x128xf32>
    %131 = arith.divf %129, %130 : vector<8x128xf32>
    %132 = math.tanh %126 : vector<8x128xf32>
    %133 = vector.extract_strided_slice %131 {offsets = [0, 0], sizes = [8, 32], strides = [1, 1]} : vector<8x128xf32> to vector<8x32xf32>
    %134 = vector.extract_strided_slice %131 {offsets = [0, 32], sizes = [8, 32], strides = [1, 1]} : vector<8x128xf32> to vector<8x32xf32>
    %135 = vector.extract_strided_slice %132 {offsets = [0, 64], sizes = [8, 32], strides = [1, 1]} : vector<8x128xf32> to vector<8x32xf32>
    %136 = vector.extract_strided_slice %131 {offsets = [0, 96], sizes = [8, 32], strides = [1, 1]} : vector<8x128xf32> to vector<8x32xf32>
    %137 = arith.mulf %134, %102 : vector<8x32xf32>
    %138 = arith.mulf %133, %135 : vector<8x32xf32>
    %139 = arith.addf %137, %138 : vector<8x32xf32>
    %140 = math.tanh %139 : vector<8x32xf32>
    %141 = arith.mulf %136, %140 : vector<8x32xf32>
    %142 = vector.extract_strided_slice %5 {offsets = [32, 0], sizes = [8, 128], strides = [1, 1]} : vector<64x128xf32> to vector<8x128xf32>
    %cst_29 = arith.constant dense<0.000000e+00> : vector<8x128xf32>
    %143 = tpu.matmul %122, %6, %cst_29 {dimension_numbers = #tpu.dot_dimension_numbers<[1], [0], [0], [1], [0, 0, 1, 1], [], []>} : vector<8x32xf32>, vector<32x128xf32>, vector<8x128xf32> -> vector<8x128xf32>
    %144 = arith.addf %142, %143 : vector<8x128xf32>
    %145 = arith.negf %144 : vector<8x128xf32>
    %146 = math.exp %145 : vector<8x128xf32>
    %cst_30 = arith.constant 1.000000e+00 : f32
    %147 = vector.broadcast %cst_30 : f32 to vector<8x128xf32>
    %148 = arith.addf %147, %146 : vector<8x128xf32>
    %149 = arith.divf %147, %148 : vector<8x128xf32>
    %150 = math.tanh %144 : vector<8x128xf32>
    %151 = vector.extract_strided_slice %149 {offsets = [0, 0], sizes = [8, 32], strides = [1, 1]} : vector<8x128xf32> to vector<8x32xf32>
    %152 = vector.extract_strided_slice %149 {offsets = [0, 32], sizes = [8, 32], strides = [1, 1]} : vector<8x128xf32> to vector<8x32xf32>
    %153 = vector.extract_strided_slice %150 {offsets = [0, 64], sizes = [8, 32], strides = [1, 1]} : vector<8x128xf32> to vector<8x32xf32>
    %154 = vector.extract_strided_slice %149 {offsets = [0, 96], sizes = [8, 32], strides = [1, 1]} : vector<8x128xf32> to vector<8x32xf32>
    %155 = arith.mulf %152, %120 : vector<8x32xf32>
    %156 = arith.mulf %151, %153 : vector<8x32xf32>
    %157 = arith.addf %155, %156 : vector<8x32xf32>
    %158 = math.tanh %157 : vector<8x32xf32>
    %159 = arith.mulf %154, %158 : vector<8x32xf32>
    %160 = tpu.concatenate %122, %141 in 1 : vector<8x32xf32>, vector<8x32xf32> -> vector<8x64xf32>
    %cst_31 = arith.constant dense<0.000000e+00> : vector<8x128xf32>
    %161 = tpu.matmul %160, %7, %cst_31 {dimension_numbers = #tpu.dot_dimension_numbers<[1], [0], [0], [1], [0, 0, 1, 1], [], []>} : vector<8x64xf32>, vector<64x128xf32>, vector<8x128xf32> -> vector<8x128xf32>
    %162 = vector.broadcast %8 : vector<1x128xf32> to vector<8x128xf32>
    %163 = arith.addf %161, %162 : vector<8x128xf32>
    %164 = arith.negf %163 : vector<8x128xf32>
    %165 = math.exp %164 : vector<8x128xf32>
    %cst_32 = arith.constant 1.000000e+00 : f32
    %166 = vector.broadcast %cst_32 : f32 to vector<8x128xf32>
    %167 = arith.addf %166, %165 : vector<8x128xf32>
    %168 = arith.divf %166, %167 : vector<8x128xf32>
    %169 = math.tanh %163 : vector<8x128xf32>
    %170 = vector.extract_strided_slice %168 {offsets = [0, 0], sizes = [8, 32], strides = [1, 1]} : vector<8x128xf32> to vector<8x32xf32>
    %171 = vector.extract_strided_slice %168 {offsets = [0, 32], sizes = [8, 32], strides = [1, 1]} : vector<8x128xf32> to vector<8x32xf32>
    %172 = vector.extract_strided_slice %169 {offsets = [0, 64], sizes = [8, 32], strides = [1, 1]} : vector<8x128xf32> to vector<8x32xf32>
    %173 = vector.extract_strided_slice %168 {offsets = [0, 96], sizes = [8, 32], strides = [1, 1]} : vector<8x128xf32> to vector<8x32xf32>
    %174 = arith.mulf %171, %139 : vector<8x32xf32>
    %175 = arith.mulf %170, %172 : vector<8x32xf32>
    %176 = arith.addf %174, %175 : vector<8x32xf32>
    %177 = math.tanh %176 : vector<8x32xf32>
    %178 = arith.mulf %173, %177 : vector<8x32xf32>
    %179 = vector.extract_strided_slice %5 {offsets = [40, 0], sizes = [8, 128], strides = [1, 1]} : vector<64x128xf32> to vector<8x128xf32>
    %cst_33 = arith.constant dense<0.000000e+00> : vector<8x128xf32>
    %180 = tpu.matmul %159, %6, %cst_33 {dimension_numbers = #tpu.dot_dimension_numbers<[1], [0], [0], [1], [0, 0, 1, 1], [], []>} : vector<8x32xf32>, vector<32x128xf32>, vector<8x128xf32> -> vector<8x128xf32>
    %181 = arith.addf %179, %180 : vector<8x128xf32>
    %182 = arith.negf %181 : vector<8x128xf32>
    %183 = math.exp %182 : vector<8x128xf32>
    %cst_34 = arith.constant 1.000000e+00 : f32
    %184 = vector.broadcast %cst_34 : f32 to vector<8x128xf32>
    %185 = arith.addf %184, %183 : vector<8x128xf32>
    %186 = arith.divf %184, %185 : vector<8x128xf32>
    %187 = math.tanh %181 : vector<8x128xf32>
    %188 = vector.extract_strided_slice %186 {offsets = [0, 0], sizes = [8, 32], strides = [1, 1]} : vector<8x128xf32> to vector<8x32xf32>
    %189 = vector.extract_strided_slice %186 {offsets = [0, 32], sizes = [8, 32], strides = [1, 1]} : vector<8x128xf32> to vector<8x32xf32>
    %190 = vector.extract_strided_slice %187 {offsets = [0, 64], sizes = [8, 32], strides = [1, 1]} : vector<8x128xf32> to vector<8x32xf32>
    %191 = vector.extract_strided_slice %186 {offsets = [0, 96], sizes = [8, 32], strides = [1, 1]} : vector<8x128xf32> to vector<8x32xf32>
    %192 = arith.mulf %189, %157 : vector<8x32xf32>
    %193 = arith.mulf %188, %190 : vector<8x32xf32>
    %194 = arith.addf %192, %193 : vector<8x32xf32>
    %195 = math.tanh %194 : vector<8x32xf32>
    %196 = arith.mulf %191, %195 : vector<8x32xf32>
    %197 = tpu.concatenate %159, %178 in 1 : vector<8x32xf32>, vector<8x32xf32> -> vector<8x64xf32>
    %cst_35 = arith.constant dense<0.000000e+00> : vector<8x128xf32>
    %198 = tpu.matmul %197, %7, %cst_35 {dimension_numbers = #tpu.dot_dimension_numbers<[1], [0], [0], [1], [0, 0, 1, 1], [], []>} : vector<8x64xf32>, vector<64x128xf32>, vector<8x128xf32> -> vector<8x128xf32>
    %199 = vector.broadcast %8 : vector<1x128xf32> to vector<8x128xf32>
    %200 = arith.addf %198, %199 : vector<8x128xf32>
    %201 = arith.negf %200 : vector<8x128xf32>
    %202 = math.exp %201 : vector<8x128xf32>
    %cst_36 = arith.constant 1.000000e+00 : f32
    %203 = vector.broadcast %cst_36 : f32 to vector<8x128xf32>
    %204 = arith.addf %203, %202 : vector<8x128xf32>
    %205 = arith.divf %203, %204 : vector<8x128xf32>
    %206 = math.tanh %200 : vector<8x128xf32>
    %207 = vector.extract_strided_slice %205 {offsets = [0, 0], sizes = [8, 32], strides = [1, 1]} : vector<8x128xf32> to vector<8x32xf32>
    %208 = vector.extract_strided_slice %205 {offsets = [0, 32], sizes = [8, 32], strides = [1, 1]} : vector<8x128xf32> to vector<8x32xf32>
    %209 = vector.extract_strided_slice %206 {offsets = [0, 64], sizes = [8, 32], strides = [1, 1]} : vector<8x128xf32> to vector<8x32xf32>
    %210 = vector.extract_strided_slice %205 {offsets = [0, 96], sizes = [8, 32], strides = [1, 1]} : vector<8x128xf32> to vector<8x32xf32>
    %211 = arith.mulf %208, %176 : vector<8x32xf32>
    %212 = arith.mulf %207, %209 : vector<8x32xf32>
    %213 = arith.addf %211, %212 : vector<8x32xf32>
    %214 = math.tanh %213 : vector<8x32xf32>
    %215 = arith.mulf %210, %214 : vector<8x32xf32>
    %216 = vector.extract_strided_slice %5 {offsets = [48, 0], sizes = [8, 128], strides = [1, 1]} : vector<64x128xf32> to vector<8x128xf32>
    %cst_37 = arith.constant dense<0.000000e+00> : vector<8x128xf32>
    %217 = tpu.matmul %196, %6, %cst_37 {dimension_numbers = #tpu.dot_dimension_numbers<[1], [0], [0], [1], [0, 0, 1, 1], [], []>} : vector<8x32xf32>, vector<32x128xf32>, vector<8x128xf32> -> vector<8x128xf32>
    %218 = arith.addf %216, %217 : vector<8x128xf32>
    %219 = arith.negf %218 : vector<8x128xf32>
    %220 = math.exp %219 : vector<8x128xf32>
    %cst_38 = arith.constant 1.000000e+00 : f32
    %221 = vector.broadcast %cst_38 : f32 to vector<8x128xf32>
    %222 = arith.addf %221, %220 : vector<8x128xf32>
    %223 = arith.divf %221, %222 : vector<8x128xf32>
    %224 = math.tanh %218 : vector<8x128xf32>
    %225 = vector.extract_strided_slice %223 {offsets = [0, 0], sizes = [8, 32], strides = [1, 1]} : vector<8x128xf32> to vector<8x32xf32>
    %226 = vector.extract_strided_slice %223 {offsets = [0, 32], sizes = [8, 32], strides = [1, 1]} : vector<8x128xf32> to vector<8x32xf32>
    %227 = vector.extract_strided_slice %224 {offsets = [0, 64], sizes = [8, 32], strides = [1, 1]} : vector<8x128xf32> to vector<8x32xf32>
    %228 = vector.extract_strided_slice %223 {offsets = [0, 96], sizes = [8, 32], strides = [1, 1]} : vector<8x128xf32> to vector<8x32xf32>
    %229 = arith.mulf %226, %194 : vector<8x32xf32>
    %230 = arith.mulf %225, %227 : vector<8x32xf32>
    %231 = arith.addf %229, %230 : vector<8x32xf32>
    %232 = math.tanh %231 : vector<8x32xf32>
    %233 = arith.mulf %228, %232 : vector<8x32xf32>
    %234 = tpu.concatenate %196, %215 in 1 : vector<8x32xf32>, vector<8x32xf32> -> vector<8x64xf32>
    %cst_39 = arith.constant dense<0.000000e+00> : vector<8x128xf32>
    %235 = tpu.matmul %234, %7, %cst_39 {dimension_numbers = #tpu.dot_dimension_numbers<[1], [0], [0], [1], [0, 0, 1, 1], [], []>} : vector<8x64xf32>, vector<64x128xf32>, vector<8x128xf32> -> vector<8x128xf32>
    %236 = vector.broadcast %8 : vector<1x128xf32> to vector<8x128xf32>
    %237 = arith.addf %235, %236 : vector<8x128xf32>
    %238 = arith.negf %237 : vector<8x128xf32>
    %239 = math.exp %238 : vector<8x128xf32>
    %cst_40 = arith.constant 1.000000e+00 : f32
    %240 = vector.broadcast %cst_40 : f32 to vector<8x128xf32>
    %241 = arith.addf %240, %239 : vector<8x128xf32>
    %242 = arith.divf %240, %241 : vector<8x128xf32>
    %243 = math.tanh %237 : vector<8x128xf32>
    %244 = vector.extract_strided_slice %242 {offsets = [0, 0], sizes = [8, 32], strides = [1, 1]} : vector<8x128xf32> to vector<8x32xf32>
    %245 = vector.extract_strided_slice %242 {offsets = [0, 32], sizes = [8, 32], strides = [1, 1]} : vector<8x128xf32> to vector<8x32xf32>
    %246 = vector.extract_strided_slice %243 {offsets = [0, 64], sizes = [8, 32], strides = [1, 1]} : vector<8x128xf32> to vector<8x32xf32>
    %247 = vector.extract_strided_slice %242 {offsets = [0, 96], sizes = [8, 32], strides = [1, 1]} : vector<8x128xf32> to vector<8x32xf32>
    %248 = arith.mulf %245, %213 : vector<8x32xf32>
    %249 = arith.mulf %244, %246 : vector<8x32xf32>
    %250 = arith.addf %248, %249 : vector<8x32xf32>
    %251 = math.tanh %250 : vector<8x32xf32>
    %252 = arith.mulf %247, %251 : vector<8x32xf32>
    %253 = vector.extract_strided_slice %5 {offsets = [56, 0], sizes = [8, 128], strides = [1, 1]} : vector<64x128xf32> to vector<8x128xf32>
    %cst_41 = arith.constant dense<0.000000e+00> : vector<8x128xf32>
    %254 = tpu.matmul %233, %6, %cst_41 {dimension_numbers = #tpu.dot_dimension_numbers<[1], [0], [0], [1], [0, 0, 1, 1], [], []>} : vector<8x32xf32>, vector<32x128xf32>, vector<8x128xf32> -> vector<8x128xf32>
    %255 = arith.addf %253, %254 : vector<8x128xf32>
    %256 = arith.negf %255 : vector<8x128xf32>
    %257 = math.exp %256 : vector<8x128xf32>
    %cst_42 = arith.constant 1.000000e+00 : f32
    %258 = vector.broadcast %cst_42 : f32 to vector<8x128xf32>
    %259 = arith.addf %258, %257 : vector<8x128xf32>
    %260 = arith.divf %258, %259 : vector<8x128xf32>
    %261 = math.tanh %255 : vector<8x128xf32>
    %262 = vector.extract_strided_slice %260 {offsets = [0, 0], sizes = [8, 32], strides = [1, 1]} : vector<8x128xf32> to vector<8x32xf32>
    %263 = vector.extract_strided_slice %260 {offsets = [0, 32], sizes = [8, 32], strides = [1, 1]} : vector<8x128xf32> to vector<8x32xf32>
    %264 = vector.extract_strided_slice %261 {offsets = [0, 64], sizes = [8, 32], strides = [1, 1]} : vector<8x128xf32> to vector<8x32xf32>
    %265 = vector.extract_strided_slice %260 {offsets = [0, 96], sizes = [8, 32], strides = [1, 1]} : vector<8x128xf32> to vector<8x32xf32>
    %266 = arith.mulf %263, %231 : vector<8x32xf32>
    %267 = arith.mulf %262, %264 : vector<8x32xf32>
    %268 = arith.addf %266, %267 : vector<8x32xf32>
    %269 = math.tanh %268 : vector<8x32xf32>
    %270 = arith.mulf %265, %269 : vector<8x32xf32>
    %271 = tpu.concatenate %233, %252 in 1 : vector<8x32xf32>, vector<8x32xf32> -> vector<8x64xf32>
    %cst_43 = arith.constant dense<0.000000e+00> : vector<8x128xf32>
    %272 = tpu.matmul %271, %7, %cst_43 {dimension_numbers = #tpu.dot_dimension_numbers<[1], [0], [0], [1], [0, 0, 1, 1], [], []>} : vector<8x64xf32>, vector<64x128xf32>, vector<8x128xf32> -> vector<8x128xf32>
    %273 = vector.broadcast %8 : vector<1x128xf32> to vector<8x128xf32>
    %274 = arith.addf %272, %273 : vector<8x128xf32>
    %275 = arith.negf %274 : vector<8x128xf32>
    %276 = math.exp %275 : vector<8x128xf32>
    %cst_44 = arith.constant 1.000000e+00 : f32
    %277 = vector.broadcast %cst_44 : f32 to vector<8x128xf32>
    %278 = arith.addf %277, %276 : vector<8x128xf32>
    %279 = arith.divf %277, %278 : vector<8x128xf32>
    %280 = math.tanh %274 : vector<8x128xf32>
    %281 = vector.extract_strided_slice %279 {offsets = [0, 0], sizes = [8, 32], strides = [1, 1]} : vector<8x128xf32> to vector<8x32xf32>
    %282 = vector.extract_strided_slice %279 {offsets = [0, 32], sizes = [8, 32], strides = [1, 1]} : vector<8x128xf32> to vector<8x32xf32>
    %283 = vector.extract_strided_slice %280 {offsets = [0, 64], sizes = [8, 32], strides = [1, 1]} : vector<8x128xf32> to vector<8x32xf32>
    %284 = vector.extract_strided_slice %279 {offsets = [0, 96], sizes = [8, 32], strides = [1, 1]} : vector<8x128xf32> to vector<8x32xf32>
    %285 = arith.mulf %282, %250 : vector<8x32xf32>
    %286 = arith.mulf %281, %283 : vector<8x32xf32>
    %287 = arith.addf %285, %286 : vector<8x32xf32>
    %288 = math.tanh %287 : vector<8x32xf32>
    %289 = arith.mulf %284, %288 : vector<8x32xf32>
    %290 = tpu.concatenate %270, %289 in 1 : vector<8x32xf32>, vector<8x32xf32> -> vector<8x64xf32>
    %cst_45 = arith.constant dense<0.000000e+00> : vector<8x128xf32>
    %291 = tpu.matmul %290, %7, %cst_45 {dimension_numbers = #tpu.dot_dimension_numbers<[1], [0], [0], [1], [0, 0, 1, 1], [], []>} : vector<8x64xf32>, vector<64x128xf32>, vector<8x128xf32> -> vector<8x128xf32>
    %292 = vector.broadcast %8 : vector<1x128xf32> to vector<8x128xf32>
    %293 = arith.addf %291, %292 : vector<8x128xf32>
    %294 = arith.negf %293 : vector<8x128xf32>
    %295 = math.exp %294 : vector<8x128xf32>
    %cst_46 = arith.constant 1.000000e+00 : f32
    %296 = vector.broadcast %cst_46 : f32 to vector<8x128xf32>
    %297 = arith.addf %296, %295 : vector<8x128xf32>
    %298 = arith.divf %296, %297 : vector<8x128xf32>
    %299 = math.tanh %293 : vector<8x128xf32>
    %300 = vector.extract_strided_slice %298 {offsets = [0, 0], sizes = [8, 32], strides = [1, 1]} : vector<8x128xf32> to vector<8x32xf32>
    %301 = vector.extract_strided_slice %298 {offsets = [0, 32], sizes = [8, 32], strides = [1, 1]} : vector<8x128xf32> to vector<8x32xf32>
    %302 = vector.extract_strided_slice %299 {offsets = [0, 64], sizes = [8, 32], strides = [1, 1]} : vector<8x128xf32> to vector<8x32xf32>
    %303 = vector.extract_strided_slice %298 {offsets = [0, 96], sizes = [8, 32], strides = [1, 1]} : vector<8x128xf32> to vector<8x32xf32>
    %304 = arith.mulf %301, %287 : vector<8x32xf32>
    %305 = arith.mulf %300, %302 : vector<8x32xf32>
    %306 = arith.addf %304, %305 : vector<8x32xf32>
    %307 = math.tanh %306 : vector<8x32xf32>
    %308 = arith.mulf %303, %307 : vector<8x32xf32>
    %309 = tpu.concatenate %67, %104, %141, %178, %215, %252, %289, %308 in 0 : vector<8x32xf32>, vector<8x32xf32>, vector<8x32xf32>, vector<8x32xf32>, vector<8x32xf32>, vector<8x32xf32>, vector<8x32xf32>, vector<8x32xf32> -> vector<64x32xf32>
    %c0_47 = arith.constant 0 : index
    %c0_48 = arith.constant 0 : index
    %310 = vector.load %arg6[%c0_47, %c0_48] : memref<32x128xf32, #tpu.memory_space<vmem>>, vector<32x128xf32>
    %cst_49 = arith.constant dense<0.000000e+00> : vector<64x128xf32>
    %311 = tpu.matmul %309, %310, %cst_49 {dimension_numbers = #tpu.dot_dimension_numbers<[1], [0], [0], [1], [0, 0, 1, 1], [], []>} : vector<64x32xf32>, vector<32x128xf32>, vector<64x128xf32> -> vector<64x128xf32>
    %c0_50 = arith.constant 0 : index
    %c0_51 = arith.constant 0 : index
    %312 = vector.load %arg7[%c0_50, %c0_51] : memref<1x128xf32, #tpu.memory_space<vmem>>, vector<1x128xf32>
    %313 = vector.broadcast %312 : vector<1x128xf32> to vector<64x128xf32>
    %314 = arith.addf %311, %313 : vector<64x128xf32>
    %c0_52 = arith.constant 0 : index
    %c0_53 = arith.constant 0 : index
    %315 = vector.load %arg8[%c0_52, %c0_53] : memref<64x128xf32, #tpu.memory_space<vmem>>, vector<64x128xf32>
    tpu.vector_store %arg8[%c0_52, %c0_53], %314 {strides = array<i32>} : memref<64x128xf32, #tpu.memory_space<vmem>>, vector<64x128xf32>,
    return
  }
}

</mosaic_0001>

<bundles_post_ra>
// kernel: network_forward.1
= control target key start
LH: loop header
LB: loop body
LE: loop exit
PB: predicated region body
PF: predicated region fallthrough
CT: control target
= control target key end

     0   :  { %vm45_vm0 = vcmask 64512   ;;  %v2720_v0 = vmov 0.0|0.0   ;;  %vm2721_vm1 = vmmov 0   ;;  %v2722_v4 = vmov 0.0   ;;  %s2723_s19 = smov 64   ;;  %s3238_s2 = inlined_call_operand.vmem [shape: f32[32,128], index: 2, kind: input, shape index: {}]   ;;  %s3239_s1 = inlined_call_operand.vmem [shape: f32[8,128], index: 1, kind: input, shape index: {}]   ;;  %s3240_s0 = inlined_call_operand.vmem [shape: f32[64,8], index: 0, kind: input, shape index: {}]   ;;  %s3241_s3 = inlined_call_operand.vmem [shape: f32[1,128], index: 3, kind: input, shape index: {}]   ;;  %s3242_s4 = inlined_call_operand.vmem [shape: f32[64,128], index: 4, kind: input, shape index: {}]   ;;  %s3243_s5 = inlined_call_operand.vmem [shape: f32[1,128], index: 5, kind: input, shape index: {}]   ;;  %s3244_s6 = inlined_call_operand.vmem [shape: f32[32,128], index: 6, kind: input, shape index: {}]   ;;  %s3245_s7 = inlined_call_operand.vmem [shape: f32[1,128], index: 7, kind: input, shape index: {}]   ;;  %s3246_s8 = inlined_call_operand.vmem [shape: f32[64,128], index: 8, kind: output, shape index: {}]  }
   0x1   :  { %2435 = vmatprep.subr.bf16.mxu1 %v2720_v0  ;;  %v175_v1 = vld [vmem:[%s3238_s2] sm:$0xff]  ;;  %v176_v2 = vld [vmem:[%s3238_s2 + $0x8] sm:$0xff]  ;;  %2183 = vmatprep.mubr.msk.f32.mxu1 %vm2721_vm1, %v2722_v4  ;;  %v177_v8 = vld [vmem:[%s3238_s2 + $0x10] sm:$0xff]  ;;  %vm188_vm2 = vcmask 261120   ;;  %vm395_vm3 = vcmask 523264  }
   0x2   :  { %v37_v3 = vld [vmem:[%s3239_s1] sm:$0xff]  ;;  %v2782_v5 = vpack.c.bf16 %v176_v2, %v175_v1  ;;  %v30_v7 = vld [vmem:[%s3240_s0 + $0x8] sm:$0xff]  ;;  %v178_v9 = vld [vmem:[%s3238_s2 + $0x18] sm:$0xff] }
   0x3   :  { %2161 = vmatprep.subr.mxu0 %v37_v3  ;;  %v29_v6 = vld [vmem:[%s3240_s0] sm:$0xff]  ;;  %v2799_v10 = vpack.c.bf16 %v178_v9, %v177_v8  ;;  %v31_v28 = vld [vmem:[%s3240_s0 + $0x10] sm:$0xff]  ;;  %v32_v29 = vld [vmem:[%s3240_s0 + $0x18] sm:$0xff] }
   0x4   :  { %2162 = vmatpush3.msra.mxu0 %v37_v3  ;;  %2163 = vmatprep.mubr.msk.f32.mxu0 %vm45_vm0, %v29_v6  ;;  %v2817_v12 = vld [vmem:[%s3241_s3] ss:$0 sm:$0xff]  ;;  %s2724_s3 = smov 32   ;;  %v180_v32 = vld [vmem:[%s3242_s4 + $0x8] sm:$0xff]  ;;  %v181_v33 = vld [vmem:[%s3242_s4 + $0x10] sm:$0xff] }
   0x5   :  { %2437 = vmatpush3.bf16.msra.mxu1 %v2782_v5  ;;  %2164 = vmatmul.mubr.msk.f32.vlgmr.msra.gmra.mrb[0].mxu0 %vm45_vm0, %v30_v7  ;;  %v33_v30 = vld [vmem:[%s3240_s0 + $0x20] sm:$0xff]  ;;  %v182_v35 = vld [vmem:[%s3242_s4 + $0x18] sm:$0xff]  ;;  %v34_v36 = vld [vmem:[%s3240_s0 + $0x28] sm:$0xff] }
   0x6   :  { %2438 = vmatprep.subr.bf16.mxu1 %v2720_v0  ;;  %2447 = vmatprep.subr.bf16.mxu0 %v2720_v0  ;;  %v179_v31 = vld [vmem:[%s3242_s4] sm:$0xff]  ;;  %v2855_v37 = vpack.c.bf16 %v182_v35, %v181_v33  ;;  %v35_v38 = vld [vmem:[%s3240_s0 + $0x30] sm:$0xff]  ;;  %v184_v40 = vld [vmem:[%s3242_s4 + $0x28] sm:$0xff] }
   0x7   :  { %2166 = vmatprep.mubr.msk.f32.mxu0 %vm45_vm0, %v31_v28  ;;  %v2844_v34 = vpack.c.bf16 %v180_v32, %v179_v31  ;;  %v183_v39 = vld [vmem:[%s3242_s4 + $0x20] sm:$0xff]  ;;  %v36_v41 = vld [vmem:[%s3240_s0 + $0x38] sm:$0xff]  ;;  %v185_v43 = vld [vmem:[%s3242_s4 + $0x30] sm:$0xff] }
   0x8   :  { %v2873_v42 = vpack.c.bf16 %v184_v40, %v183_v39  ;;  %v186_v44 = vld [vmem:[%s3242_s4 + $0x38] sm:$0xff]  ;;  %v2925_v58 = vld [vmem:[%s3243_s5] ss:$0 sm:$0xff] }
   0x9   :  { %2440 = vmatpush3.bf16.msra.mxu1 %v2799_v10  ;;  %2167 = vmatmul.mubr.msk.f32.gmra.mrb[2].mxu0 %vm45_vm0, %v32_v29  ;;  %v2887_v46 = vpack.c.bf16 %v186_v44, %v185_v43 }
   0xa   :  { %2441 = vmatprep.subr.bf16.mxu1 %v2720_v0  ;;  %2169 = vmatprep.mubr.msk.f32.mxu0 %vm45_vm0, %v33_v30 }
   0xb   :  { %2449 = vmatpush3.bf16.msra.mxu0 %v2844_v34 }
   0xc   :  { %2184 = vmatmul.mubr.f32.vlgmr.msra.gmra.mrb[0].mxu1 %v2722_v4  ;;  %2450 = vmatprep.subr.bf16.mxu0 %v2720_v0 }
   0xd   :  { %2443 = vmatpush3.bf16.msra.mxu1 %v2782_v5  ;;  %2194 = vmatprep.mubr.msk.f32.mxu1 %vm2721_vm1, %v2722_v4 }
   0xe   :  { %2444 = vmatprep.subr.bf16.mxu1 %v2720_v0  ;;  %2170 = vmatmul.mubr.msk.f32.gmra.mrb[4].mxu0 %vm45_vm0, %v34_v36 }
   0xf   :  { %2172 = vmatprep.mubr.msk.f32.mxu0 %vm45_vm0, %v35_v38  ;;  %2452 = vmatpush3.bf16.msra.mxu0 %v2855_v37 }
  0x10   :  { %2453 = vmatprep.subr.bf16.mxu0 %v2720_v0 }
  0x11   :  { %2446 = vmatpush3.bf16.msra.mxu1 %v2799_v10 }
  0x12   :  { %2477 = vmatprep.subr.bf16.mxu1 %v2720_v0  ;;  %2173 = vmatmul.mubr.msk.f32.gmra.mrb[6].mxu0 %vm45_vm0, %v36_v41 }
  0x13   :  { %2213 = vmatprep.mubr.msk.f32.mxu0 %vm2721_vm1, %v2722_v4  ;;  %2455 = vmatpush3.bf16.msra.mxu0 %v2873_v42 }
  0x14   :  { %2456 = vmatprep.subr.bf16.mxu0 %v2720_v0 }
  0x17   :  { %2458 = vmatpush3.bf16.msra.mxu0 %v2887_v46 }
  0x18   :  { %2459 = vmatprep.subr.bf16.mxu0 %v2720_v0 }
  0xd8   :  { %v2812_v11 = vpop.f32.mrb[0].mxu0 }
  0xd9   :  { %v136_v13 = vpop.f32.mrb[1].mxu0  ;;  %v142_v57 = vadd.f32 %v2812_v11, %v2817_v12 }
  0xda   :  { %v137_v14 = vadd.f32 %v2817_v12, %v136_v13 }
  0xdc   :  { %v2893_v49 = vpop.f32.mrb[2].mxu0 }
  0xdd   :  { %v2895_v50 = vpop.f32.mrb[3].mxu0 }
  0xde   :  { %v147_v36 = vadd.f32 %v2817_v12, %v2895_v50 }
  0xdf   :  { %v258_v15 = vpop.f32.mrb[0].mxu1 }
  0xe0   :  { %v262_v16 = vadd.f32 %v258_v15, %v137_v14  ;;  %v2185_v17 = vpop.f32.mrb[1].mxu1 }
  0xe1   :  { %v2897_v51 = vpop.f32.mrb[4].mxu0 }
  0xe2   :  { %2592 = vtanh.f32 %v262_v16  ;;  %v1987_v19 = vmul.f32 -1.442695, %v262_v16  ;;  %v2899_v52 = vpop.f32.mrb[5].mxu0 }
  0xe4   :  { %2594 = vpow2.f32 %v1987_v19 }
  0xe5   :  { %v2901_v53 = vpop.f32.mrb[6].mxu0 }
  0xe6   :  { %v2903_v54 = vpop.f32.mrb[7].mxu0 }
  0xec   :  { %v2593_v18 = vpop.eup %2592 }
  0xed   :  { %272 = vrot.lane.b32.xlu0 %v2593_v18, %s2723_s19 }
  0xee   :  { %v2595_v20 = vpop.eup %2594 }
  0xef   :  { %v266_v21 = vadd.f32 1.0, %v2595_v20 }
  0xf1   :  { %2596 = vrcp.f32 %v266_v21 }
  0xfb   :  { %v2597_v22 = vpop.eup %2596 }
  0xfc   :  { %v270_v25 = vmul.f32 0.0, %v2597_v22 }
 0x15f   :  { %v273_v23 = vpop.permute.xlu0 %272 }
 0x160   :  { %v275_v24 = vmul.f32 %v2597_v22, %v273_v23 }
 0x162   :  { %277 = vrot.lane.b32.xlu0 %v275_v24, %s2724_s3 }
 0x1d4   :  { %v278_v26 = vpop.permute.xlu0 %277 }
 0x1d5   :  { %v2822_v27 = vadd.f32 %v278_v26, %v270_v25 }
 0x1d7   :  { %2598 = vtanh.f32 %v2822_v27 }
 0x1e1   :  { %v2599_v45 = vpop.eup %2598 }
 0x1e2   :  { %283 = vrot.lane.b32.xlu1 %v2599_v45, %s2723_s19 }
 0x254   :  { %v284_v47 = vpop.permute.xlu1 %283 }
 0x255   :  { %v286_v48 = vmul.f32 %v2597_v22, %v284_v47 }
 0x257   :  { %288 = vrot.lane.b32.xlu1 %v286_v48, %s2724_s3 }
 0x2c9   :  { %v289_v55 = vpop.permute.xlu1 %288 }
 0x2ca   :  { %v388_v56 = vsel %vm188_vm2, %v289_v55, 0.0  ;;  %2195 = vmatmul.mubr.msk.f32.vlgmr.msra.gmra.mrb[2].mxu1 %vm188_vm2, %v289_v55 }
 0x2cb   :  { %2214 = vmatmul.mubr.msk.f32.vlgmr.msra.gmra.mrb[8].mxu0 %vm395_vm3, %v388_v56  ;;  %2479 = vmatpush3.bf16.msra.mxu1 %v2782_v5 }
 0x2cc   :  { %2461 = vmatpush3.bf16.msra.mxu0 %v2782_v5  ;;  %2224 = vmatprep.mubr.msk.f32.mxu0 %vm2721_vm1, %v2722_v4 }
 0x2cd   :  { %2462 = vmatprep.subr.bf16.mxu0 %v2720_v0  ;;  %2480 = vmatprep.subr.bf16.mxu1 %v2720_v0 }
 0x2ce   :  { %2254 = vmatprep.mubr.msk.f32.mxu1 %vm2721_vm1, %v2722_v4 }
 0x2cf   :  { %2482 = vmatpush3.bf16.msra.mxu1 %v2799_v10 }
 0x2d0   :  { %2464 = vmatpush3.bf16.msra.mxu0 %v2799_v10  ;;  %2483 = vmatprep.subr.bf16.mxu1 %v2720_v0 }
 0x2d1   :  { %2465 = vmatprep.subr.bf16.mxu0 %v2720_v0 }
 0x39d   :  { %v358_v59 = vpop.f32.mrb[2].mxu1 }
 0x39e   :  { %v362_v60 = vadd.f32 %v358_v59, %v142_v57  ;;  %v2196_v61 = vpop.f32.mrb[3].mxu1  ;;  %v465_v62 = vpop.f32.mrb[8].mxu0 }
 0x39f   :  { %v466_v63 = vadd.f32 %v2925_v58, %v465_v62  ;;  %v2215_v1 = vpop.f32.mrb[9].mxu0 }
 0x3a0   :  { %2600 = vtanh.f32 %v362_v60  ;;  %v1989_v6 = vmul.f32 -1.442695, %v362_v60 }
 0x3a1   :  { %2602 = vtanh.f32 %v466_v63  ;;  %v1992_v7 = vmul.f32 -1.442695, %v466_v63 }
 0x3a2   :  { %2604 = vpow2.f32 %v1989_v6 }
 0x3a3   :  { %2606 = vpow2.f32 %v1992_v7 }
 0x3aa   :  { %v2601_v2 = vpop.eup %2600 }
 0x3ab   :  { %v2603_v3 = vpop.eup %2602  ;;  %372 = vrot.lane.b32.xlu0 %v2601_v2, %s2723_s19 }
 0x3ac   :  { %478 = vrot.lane.b32.xlu1 %v2603_v3, %s2723_s19  ;;  %v2605_v8 = vpop.eup %2604 }
 0x3ad   :  { %v2607_v9 = vpop.eup %2606  ;;  %v366_v11 = vadd.f32 1.0, %v2605_v8 }
 0x3ae   :  { %v472_v13 = vadd.f32 1.0, %v2607_v9 }
 0x3af   :  { %2608 = vrcp.f32 %v366_v11 }
 0x3b0   :  { %2610 = vrcp.f32 %v472_v13 }
 0x3b9   :  { %v2609_v14 = vpop.eup %2608 }
 0x3ba   :  { %v2611_v16 = vpop.eup %2610  ;;  %v370_v20 = vmul.f32 %v2609_v14, %v2822_v27 }
 0x3bb   :  { %v476_v22 = vmul.f32 0.0, %v2611_v16 }
 0x41d   :  { %v373_v15 = vpop.permute.xlu0 %372 }
 0x41e   :  { %v375_v17 = vmul.f32 %v2609_v14, %v373_v15  ;;  %v479_v18 = vpop.permute.xlu1 %478 }
 0x41f   :  { %v481_v19 = vmul.f32 %v2611_v16, %v479_v18 }
 0x420   :  { %377 = vrot.lane.b32.xlu0 %v375_v17, %s2724_s3 }
 0x421   :  { %483 = vrot.lane.b32.xlu1 %v481_v19, %s2724_s3 }
 0x492   :  { %v378_v21 = vpop.permute.xlu0 %377 }
 0x493   :  { %v2933_v23 = vadd.f32 %v378_v21, %v370_v20  ;;  %v484_v24 = vpop.permute.xlu1 %483 }
 0x494   :  { %v2935_v25 = vadd.f32 %v484_v24, %v476_v22  ;;  %v152_v22 = vadd.f32 %v2893_v49, %v2817_v12 }
 0x495   :  { %2612 = vtanh.f32 %v2933_v23 }
 0x496   :  { %2614 = vtanh.f32 %v2935_v25 }
 0x49f   :  { %v2613_v26 = vpop.eup %2612 }
 0x4a0   :  { %v2615_v28 = vpop.eup %2614  ;;  %383 = vrot.lane.b32.xlu0 %v2613_v26, %s2723_s19 }
 0x4a1   :  { %489 = vrot.lane.b32.xlu1 %v2615_v28, %s2723_s19 }
 0x512   :  { %v384_v29 = vpop.permute.xlu0 %383 }
 0x513   :  { %v386_v30 = vmul.f32 %v2609_v14, %v384_v29  ;;  %v490_v27 = vpop.permute.xlu1 %489 }
 0x514   :  { %v2941_v31 = vmul.f32 %v2611_v16, %v490_v27 }
 0x515   :  { %494 = vrot.lane.b32.xlu0 %v386_v30, %s2724_s3 }
 0x516   :  { %595 = vrot.lane.b32.xlu1 %v2941_v31, %s2723_s19 }
 0x587   :  { %v495_v32 = vpop.permute.xlu0 %494 }
 0x588   :  { %2225 = vmatmul.mubr.msk.f32.vlgmr.msra.gmra.mrb[10].mxu0 %vm188_vm2, %v495_v32  ;;  %v596_v33 = vpop.permute.xlu1 %595 }
 0x589   :  { %2467 = vmatpush3.bf16.msra.mxu0 %v2844_v34  ;;  %2243 = vmatprep.mubr.msk.f32.mxu0 %vm2721_vm1, %v2722_v4  ;;  %v598_v35 = vsel %vm188_vm2, %v495_v32, %v596_v33 }
 0x58a   :  { %2468 = vmatprep.subr.bf16.mxu0 %v2720_v0 }
 0x58d   :  { %2470 = vmatpush3.bf16.msra.mxu0 %v2855_v37 }
 0x58e   :  { %2471 = vmatprep.subr.bf16.mxu0 %v2720_v0 }
 0x591   :  { %2473 = vmatpush3.bf16.msra.mxu0 %v2873_v42 }
 0x592   :  { %2474 = vmatprep.subr.bf16.mxu0 %v2720_v0 }
 0x595   :  { %2476 = vmatpush3.bf16.msra.mxu0 %v2887_v46 }
 0x596   :  { %2495 = vmatprep.subr.bf16.mxu0 %v2720_v0 }
 0x598   :  { %2244 = vmatmul.mubr.msk.f32.vlgmr.msra.gmra.mrb[12].mxu0 %vm395_vm3, %v598_v35 }
 0x599   :  { %2497 = vmatpush3.bf16.msra.mxu0 %v2782_v5  ;;  %2284 = vmatprep.mubr.msk.f32.mxu0 %vm2721_vm1, %v2722_v4 }
 0x59a   :  { %2498 = vmatprep.subr.bf16.mxu0 %v2720_v0 }
 0x59d   :  { %2500 = vmatpush3.bf16.msra.mxu0 %v2799_v10 }
 0x59e   :  { %2501 = vmatprep.subr.bf16.mxu0 %v2720_v0 }
 0x65b   :  { %v564_v38 = vpop.f32.mrb[10].mxu0 }
 0x65c   :  { %v568_v39 = vadd.f32 %v564_v38, %v147_v36  ;;  %v2226_v40 = vpop.f32.mrb[11].mxu0 }
 0x65e   :  { %2616 = vtanh.f32 %v568_v39  ;;  %v1994_v48 = vmul.f32 -1.442695, %v568_v39 }
 0x668   :  { %v2617_v41 = vpop.eup %2616 }
 0x669   :  { %578 = vrot.lane.b32.xlu0 %v2617_v41, %s2723_s19 }
 0x66b   :  { %v668_v43 = vpop.f32.mrb[12].mxu0 }
 0x66c   :  { %v669_v44 = vadd.f32 %v2925_v58, %v668_v43  ;;  %v2245_v45 = vpop.f32.mrb[13].mxu0 }
 0x66e   :  { %2618 = vtanh.f32 %v669_v44  ;;  %v1996_v56 = vmul.f32 -1.442695, %v669_v44 }
 0x66f   :  { %2620 = vpow2.f32 %v1994_v48 }
 0x670   :  { %2622 = vpow2.f32 %v1996_v56 }
 0x678   :  { %v2619_v47 = vpop.eup %2618 }
 0x679   :  { %681 = vrot.lane.b32.xlu1 %v2619_v47, %s2723_s19  ;;  %v2621_v55 = vpop.eup %2620 }
 0x67a   :  { %v572_v50 = vadd.f32 1.0, %v2621_v55  ;;  %v2623_v57 = vpop.eup %2622 }
 0x67b   :  { %v675_v62 = vadd.f32 1.0, %v2623_v57 }
 0x67c   :  { %2624 = vrcp.f32 %v572_v50 }
 0x67d   :  { %2626 = vrcp.f32 %v675_v62 }
 0x686   :  { %v2625_v59 = vpop.eup %2624 }
 0x687   :  { %v2627_v63 = vpop.eup %2626  ;;  %v576_v3 = vmul.f32 %v2625_v59, %v2933_v23 }
 0x688   :  { %v679_v9 = vmul.f32 %v2627_v63, %v2935_v25 }
 0x6db   :  { %v579_v60 = vpop.permute.xlu0 %578 }
 0x6dc   :  { %v581_v61 = vmul.f32 %v2625_v59, %v579_v60 }
 0x6de   :  { %583 = vrot.lane.b32.xlu0 %v581_v61, %s2724_s3 }
 0x6eb   :  { %v682_v1 = vpop.permute.xlu1 %681 }
 0x6ec   :  { %v684_v2 = vmul.f32 %v2627_v63, %v682_v1 }
 0x6ee   :  { %686 = vrot.lane.b32.xlu1 %v684_v2, %s2724_s3 }
 0x750   :  { %v584_v6 = vpop.permute.xlu0 %583 }
 0x751   :  { %v2973_v7 = vadd.f32 %v584_v6, %v576_v3 }
 0x753   :  { %2628 = vtanh.f32 %v2973_v7 }
 0x75d   :  { %v2629_v8 = vpop.eup %2628 }
 0x75e   :  { %589 = vrot.lane.b32.xlu0 %v2629_v8, %s2723_s19 }
 0x760   :  { %v687_v11 = vpop.permute.xlu1 %686 }
 0x761   :  { %v2978_v13 = vadd.f32 %v687_v11, %v679_v9 }
 0x763   :  { %2630 = vtanh.f32 %v2978_v13 }
 0x76d   :  { %v2631_v14 = vpop.eup %2630 }
 0x76e   :  { %692 = vrot.lane.b32.xlu1 %v2631_v14, %s2723_s19 }
 0x7d0   :  { %v590_v15 = vpop.permute.xlu0 %589 }
 0x7d1   :  { %v592_v16 = vmul.f32 %v2625_v59, %v590_v15 }
 0x7d3   :  { %697 = vrot.lane.b32.xlu0 %v592_v16, %s2724_s3 }
 0x7e0   :  { %v693_v17 = vpop.permute.xlu1 %692 }
 0x7e1   :  { %v2983_v18 = vmul.f32 %v2627_v63, %v693_v17 }
 0x7e3   :  { %798 = vrot.lane.b32.xlu1 %v2983_v18, %s2723_s19 }
 0x845   :  { %v698_v19 = vpop.permute.xlu0 %697 }
 0x846   :  { %2255 = vmatmul.mubr.msk.f32.vlgmr.msra.gmra.mrb[4].mxu1 %vm188_vm2, %v698_v19 }
 0x847   :  { %2485 = vmatpush3.bf16.msra.mxu1 %v2844_v34  ;;  %2273 = vmatprep.mubr.msk.f32.mxu1 %vm2721_vm1, %v2722_v4 }
 0x848   :  { %2486 = vmatprep.subr.bf16.mxu1 %v2720_v0 }
 0x84b   :  { %2488 = vmatpush3.bf16.msra.mxu1 %v2855_v37 }
 0x84c   :  { %2489 = vmatprep.subr.bf16.mxu1 %v2720_v0 }
 0x84f   :  { %2491 = vmatpush3.bf16.msra.mxu1 %v2873_v42 }
 0x850   :  { %2492 = vmatprep.subr.bf16.mxu1 %v2720_v0 }
 0x853   :  { %2494 = vmatpush3.bf16.msra.mxu1 %v2887_v46 }
 0x854   :  { %2513 = vmatprep.subr.bf16.mxu1 %v2720_v0 }
 0x855   :  { %v799_v20 = vpop.permute.xlu1 %798 }
 0x856   :  { %v801_v21 = vsel %vm188_vm2, %v698_v19, %v799_v20 }
 0x857   :  { %2274 = vmatmul.mubr.msk.f32.vlgmr.msra.gmra.mrb[6].mxu1 %vm395_vm3, %v801_v21 }
 0x858   :  { %2515 = vmatpush3.bf16.msra.mxu1 %v2782_v5  ;;  %2314 = vmatprep.mubr.msk.f32.mxu1 %vm2721_vm1, %v2722_v4 }
 0x859   :  { %2516 = vmatprep.subr.bf16.mxu1 %v2720_v0 }
 0x85c   :  { %2518 = vmatpush3.bf16.msra.mxu1 %v2799_v10 }
 0x85d   :  { %2519 = vmatprep.subr.bf16.mxu1 %v2720_v0 }
 0x919   :  { %v767_v23 = vpop.f32.mrb[4].mxu1 }
 0x91a   :  { %v771_v24 = vadd.f32 %v767_v23, %v152_v22  ;;  %v2256_v25 = vpop.f32.mrb[5].mxu1 }
 0x91c   :  { %2632 = vtanh.f32 %v771_v24  ;;  %v1998_v32 = vmul.f32 -1.442695, %v771_v24 }
 0x926   :  { %v2633_v26 = vpop.eup %2632 }
 0x927   :  { %781 = vrot.lane.b32.xlu0 %v2633_v26, %s2723_s19 }
 0x92a   :  { %v871_v28 = vpop.f32.mrb[6].mxu1 }
 0x92b   :  { %v872_v29 = vadd.f32 %v2925_v58, %v871_v28  ;;  %v2275_v30 = vpop.f32.mrb[7].mxu1 }
 0x92d   :  { %2634 = vtanh.f32 %v872_v29  ;;  %v2000_v49 = vmul.f32 -1.442695, %v872_v29 }
 0x92e   :  { %2636 = vpow2.f32 %v1998_v32 }
 0x937   :  { %v2635_v27 = vpop.eup %2634 }
 0x938   :  { %884 = vrot.lane.b32.xlu1 %v2635_v27, %s2723_s19  ;;  %v2637_v33 = vpop.eup %2636 }
 0x939   :  { %v775_v35 = vadd.f32 1.0, %v2637_v33 }
 0x93b   :  { %2638 = vrcp.f32 %v775_v35 }
 0x93c   :  { %2640 = vpow2.f32 %v2000_v49 }
 0x945   :  { %v2639_v36 = vpop.eup %2638 }
 0x946   :  { %v2641_v38 = vpop.eup %2640  ;;  %v779_v47 = vmul.f32 %v2639_v36, %v2973_v7  ;;  %v157_v7 = vadd.f32 %v2817_v12, %v2899_v52 }
 0x947   :  { %v878_v41 = vadd.f32 1.0, %v2641_v38 }
 0x949   :  { %2642 = vrcp.f32 %v878_v41 }
 0x953   :  { %v2643_v43 = vpop.eup %2642 }
 0x954   :  { %v882_v50 = vmul.f32 %v2643_v43, %v2978_v13 }
 0x999   :  { %v782_v39 = vpop.permute.xlu0 %781 }
 0x99a   :  { %v784_v40 = vmul.f32 %v2639_v36, %v782_v39 }
 0x99c   :  { %786 = vrot.lane.b32.xlu0 %v784_v40, %s2724_s3 }
 0x9aa   :  { %v885_v44 = vpop.permute.xlu1 %884 }
 0x9ab   :  { %v887_v45 = vmul.f32 %v2643_v43, %v885_v44 }
 0x9ad   :  { %889 = vrot.lane.b32.xlu1 %v887_v45, %s2724_s3 }
 0xa0e   :  { %v787_v48 = vpop.permute.xlu0 %786 }
 0xa0f   :  { %v3014_v55 = vadd.f32 %v787_v48, %v779_v47 }
 0xa11   :  { %2644 = vtanh.f32 %v3014_v55 }
 0xa1b   :  { %v2645_v56 = vpop.eup %2644 }
 0xa1c   :  { %792 = vrot.lane.b32.xlu0 %v2645_v56, %s2723_s19 }
 0xa1f   :  { %v890_v57 = vpop.permute.xlu1 %889 }
 0xa20   :  { %v3019_v59 = vadd.f32 %v890_v57, %v882_v50 }
 0xa22   :  { %2646 = vtanh.f32 %v3019_v59 }
 0xa2c   :  { %v2647_v60 = vpop.eup %2646 }
 0xa2d   :  { %895 = vrot.lane.b32.xlu1 %v2647_v60, %s2723_s19 }
 0xa8e   :  { %v793_v61 = vpop.permute.xlu0 %792 }
 0xa8f   :  { %v795_v62 = vmul.f32 %v2639_v36, %v793_v61 }
 0xa91   :  { %900 = vrot.lane.b32.xlu0 %v795_v62, %s2724_s3 }
 0xa9f   :  { %v896_v63 = vpop.permute.xlu1 %895 }
 0xaa0   :  { %v3024_v1 = vmul.f32 %v2643_v43, %v896_v63 }
 0xaa2   :  { %1001 = vrot.lane.b32.xlu1 %v3024_v1, %s2723_s19 }
 0xb03   :  { %v901_v2 = vpop.permute.xlu0 %900 }
 0xb04   :  { %2285 = vmatmul.mubr.msk.f32.vlgmr.msra.gmra.mrb[14].mxu0 %vm188_vm2, %v901_v2 }
 0xb05   :  { %2503 = vmatpush3.bf16.msra.mxu0 %v2844_v34  ;;  %2303 = vmatprep.mubr.msk.f32.mxu0 %vm2721_vm1, %v2722_v4 }
 0xb06   :  { %2504 = vmatprep.subr.bf16.mxu0 %v2720_v0 }
 0xb09   :  { %2506 = vmatpush3.bf16.msra.mxu0 %v2855_v37 }
 0xb0a   :  { %2507 = vmatprep.subr.bf16.mxu0 %v2720_v0 }
 0xb0d   :  { %2509 = vmatpush3.bf16.msra.mxu0 %v2873_v42 }
 0xb0e   :  { %2510 = vmatprep.subr.bf16.mxu0 %v2720_v0 }
 0xb11   :  { %2512 = vmatpush3.bf16.msra.mxu0 %v2887_v46 }
 0xb12   :  { %2531 = vmatprep.subr.bf16.mxu0 %v2720_v0 }
 0xb14   :  { %v1002_v3 = vpop.permute.xlu1 %1001 }
 0xb15   :  { %v1004_v6 = vsel %vm188_vm2, %v901_v2, %v1002_v3 }
 0xb16   :  { %2304 = vmatmul.mubr.msk.f32.vlgmr.msra.gmra.mrb[16].mxu0 %vm395_vm3, %v1004_v6 }
 0xb17   :  { %2533 = vmatpush3.bf16.msra.mxu0 %v2782_v5  ;;  %2344 = vmatprep.mubr.msk.f32.mxu0 %vm2721_vm1, %v2722_v4 }
 0xb18   :  { %2534 = vmatprep.subr.bf16.mxu0 %v2720_v0 }
 0xb1b   :  { %2536 = vmatpush3.bf16.msra.mxu0 %v2799_v10 }
 0xb1c   :  { %2537 = vmatprep.subr.bf16.mxu0 %v2720_v0 }
 0xbd7   :  { %v970_v8 = vpop.f32.mrb[14].mxu0 }
 0xbd8   :  { %v974_v9 = vadd.f32 %v970_v8, %v157_v7  ;;  %v2286_v11 = vpop.f32.mrb[15].mxu0 }
 0xbda   :  { %2648 = vtanh.f32 %v974_v9  ;;  %v2002_v19 = vmul.f32 -1.442695, %v974_v9 }
 0xbe4   :  { %v2649_v13 = vpop.eup %2648 }
 0xbe5   :  { %984 = vrot.lane.b32.xlu0 %v2649_v13, %s2723_s19 }
 0xbe9   :  { %v1074_v14 = vpop.f32.mrb[16].mxu0 }
 0xbea   :  { %v1075_v15 = vadd.f32 %v2925_v58, %v1074_v14  ;;  %v2305_v16 = vpop.f32.mrb[17].mxu0 }
 0xbec   :  { %2650 = vtanh.f32 %v1075_v15  ;;  %v2004_v52 = vmul.f32 -1.442695, %v1075_v15 }
 0xbed   :  { %2652 = vpow2.f32 %v2002_v19 }
 0xbf6   :  { %v2651_v17 = vpop.eup %2650 }
 0xbf7   :  { %1087 = vrot.lane.b32.xlu1 %v2651_v17, %s2723_s19  ;;  %v2653_v20 = vpop.eup %2652 }
 0xbf8   :  { %v978_v21 = vadd.f32 1.0, %v2653_v20 }
 0xbfa   :  { %2654 = vrcp.f32 %v978_v21 }
 0xbfb   :  { %2656 = vpow2.f32 %v2004_v52 }
 0xc04   :  { %v2655_v22 = vpop.eup %2654 }
 0xc05   :  { %v2657_v24 = vpop.eup %2656  ;;  %v982_v27 = vmul.f32 %v2655_v22, %v3014_v55  ;;  %v162_v55 = vadd.f32 %v2897_v51, %v2817_v12 }
 0xc06   :  { %v1081_v26 = vadd.f32 1.0, %v2657_v24 }
 0xc08   :  { %2658 = vrcp.f32 %v1081_v26 }
 0xc12   :  { %v2659_v28 = vpop.eup %2658 }
 0xc13   :  { %v1085_v49 = vmul.f32 %v2659_v28, %v3019_v59 }
 0xc57   :  { %v985_v23 = vpop.permute.xlu0 %984 }
 0xc58   :  { %v987_v25 = vmul.f32 %v2655_v22, %v985_v23 }
 0xc5a   :  { %989 = vrot.lane.b32.xlu0 %v987_v25, %s2724_s3 }
 0xc69   :  { %v1088_v29 = vpop.permute.xlu1 %1087 }
 0xc6a   :  { %v1090_v30 = vmul.f32 %v2659_v28, %v1088_v29 }
 0xc6c   :  { %1092 = vrot.lane.b32.xlu1 %v1090_v30, %s2724_s3 }
 0xccc   :  { %v990_v32 = vpop.permute.xlu0 %989 }
 0xccd   :  { %v3055_v33 = vadd.f32 %v990_v32, %v982_v27  ;;  %v167_v27 = vadd.f32 %v2817_v12, %v2903_v54 }
 0xccf   :  { %2660 = vtanh.f32 %v3055_v33 }
 0xcd9   :  { %v2661_v35 = vpop.eup %2660 }
 0xcda   :  { %995 = vrot.lane.b32.xlu0 %v2661_v35, %s2723_s19 }
 0xcde   :  { %v1093_v36 = vpop.permute.xlu1 %1092 }
 0xcdf   :  { %v3060_v38 = vadd.f32 %v1093_v36, %v1085_v49 }
 0xce1   :  { %2662 = vtanh.f32 %v3060_v38 }
 0xceb   :  { %v2663_v39 = vpop.eup %2662 }
 0xcec   :  { %1098 = vrot.lane.b32.xlu1 %v2663_v39, %s2723_s19 }
 0xd4c   :  { %v996_v40 = vpop.permute.xlu0 %995 }
 0xd4d   :  { %v998_v41 = vmul.f32 %v2655_v22, %v996_v40 }
 0xd4f   :  { %1103 = vrot.lane.b32.xlu0 %v998_v41, %s2724_s3 }
 0xd5e   :  { %v1099_v43 = vpop.permute.xlu1 %1098 }
 0xd5f   :  { %v3065_v44 = vmul.f32 %v2659_v28, %v1099_v43 }
 0xd61   :  { %1204 = vrot.lane.b32.xlu1 %v3065_v44, %s2723_s19 }
 0xdc1   :  { %v1104_v45 = vpop.permute.xlu0 %1103 }
 0xdc2   :  { %2315 = vmatmul.mubr.msk.f32.vlgmr.msra.gmra.mrb[8].mxu1 %vm188_vm2, %v1104_v45 }
 0xdc3   :  { %2521 = vmatpush3.bf16.msra.mxu1 %v2844_v34  ;;  %2333 = vmatprep.mubr.msk.f32.mxu1 %vm2721_vm1, %v2722_v4 }
 0xdc4   :  { %2522 = vmatprep.subr.bf16.mxu1 %v2720_v0 }
 0xdc7   :  { %2524 = vmatpush3.bf16.msra.mxu1 %v2855_v37 }
 0xdc8   :  { %2525 = vmatprep.subr.bf16.mxu1 %v2720_v0 }
 0xdcb   :  { %2527 = vmatpush3.bf16.msra.mxu1 %v2873_v42 }
 0xdcc   :  { %2528 = vmatprep.subr.bf16.mxu1 %v2720_v0 }
 0xdcf   :  { %2530 = vmatpush3.bf16.msra.mxu1 %v2887_v46 }
 0xdd0   :  { %2549 = vmatprep.subr.bf16.mxu1 %v2720_v0 }
 0xdd3   :  { %v1205_v47 = vpop.permute.xlu1 %1204 }
 0xdd4   :  { %v1207_v48 = vsel %vm188_vm2, %v1104_v45, %v1205_v47 }
 0xdd5   :  { %2334 = vmatmul.mubr.msk.f32.vlgmr.msra.gmra.mrb[10].mxu1 %vm395_vm3, %v1207_v48 }
 0xdd6   :  { %2551 = vmatpush3.bf16.msra.mxu1 %v2782_v5  ;;  %2374 = vmatprep.mubr.msk.f32.mxu1 %vm2721_vm1, %v2722_v4 }
 0xdd7   :  { %2552 = vmatprep.subr.bf16.mxu1 %v2720_v0 }
 0xdda   :  { %2554 = vmatpush3.bf16.msra.mxu1 %v2799_v10 }
 0xddb   :  { %2555 = vmatprep.subr.bf16.mxu1 %v2720_v0 }
 0xe95   :  { %v1173_v56 = vpop.f32.mrb[8].mxu1 }
 0xe96   :  { %v1177_v50 = vadd.f32 %v1173_v56, %v162_v55  ;;  %v2316_v57 = vpop.f32.mrb[9].mxu1 }
 0xe98   :  { %2664 = vtanh.f32 %v1177_v50  ;;  %v2006_v10 = vmul.f32 -1.442695, %v1177_v50 }
 0xea2   :  { %v2665_v59 = vpop.eup %2664 }
 0xea3   :  { %1187 = vrot.lane.b32.xlu0 %v2665_v59, %s2723_s19 }
 0xea8   :  { %v1277_v5 = vpop.f32.mrb[10].mxu1 }
 0xea9   :  { %v1278_v60 = vadd.f32 %v2925_v58, %v1277_v5  ;;  %v2335_v61 = vpop.f32.mrb[11].mxu1 }
 0xeab   :  { %2666 = vtanh.f32 %v1278_v60  ;;  %v2008_v51 = vmul.f32 -1.442695, %v1278_v60 }
 0xeac   :  { %2668 = vpow2.f32 %v2006_v10 }
 0xeb5   :  { %v2667_v62 = vpop.eup %2666 }
 0xeb6   :  { %1290 = vrot.lane.b32.xlu1 %v2667_v62, %s2723_s19  ;;  %v2669_v63 = vpop.eup %2668 }
 0xeb7   :  { %v1181_v2 = vadd.f32 1.0, %v2669_v63 }
 0xeb9   :  { %2670 = vrcp.f32 %v1181_v2 }
 0xeba   :  { %2672 = vpow2.f32 %v2008_v51 }
 0xec3   :  { %v2671_v3 = vpop.eup %2670 }
 0xec4   :  { %v2673_v8 = vpop.eup %2672  ;;  %v1185_v15 = vmul.f32 %v2671_v3, %v3055_v33 }
 0xec5   :  { %v1284_v9 = vadd.f32 1.0, %v2673_v8 }
 0xec7   :  { %2674 = vrcp.f32 %v1284_v9 }
 0xed1   :  { %v2675_v11 = vpop.eup %2674 }
 0xed2   :  { %v1288_v20 = vmul.f32 %v2675_v11, %v3060_v38 }
 0xf15   :  { %v1188_v6 = vpop.permute.xlu0 %1187 }
 0xf16   :  { %v1190_v7 = vmul.f32 %v2671_v3, %v1188_v6 }
 0xf18   :  { %1192 = vrot.lane.b32.xlu0 %v1190_v7, %s2724_s3 }
 0xf28   :  { %v1291_v13 = vpop.permute.xlu1 %1290 }
 0xf29   :  { %v1293_v14 = vmul.f32 %v2675_v11, %v1291_v13 }
 0xf2b   :  { %1295 = vrot.lane.b32.xlu1 %v1293_v14, %s2724_s3 }
 0xf8a   :  { %v1193_v16 = vpop.permute.xlu0 %1192 }
 0xf8b   :  { %v3096_v17 = vadd.f32 %v1193_v16, %v1185_v15 }
 0xf8d   :  { %2676 = vtanh.f32 %v3096_v17 }
 0xf97   :  { %v2677_v19 = vpop.eup %2676 }
 0xf98   :  { %1198 = vrot.lane.b32.xlu0 %v2677_v19, %s2723_s19 }
 0xf9d   :  { %v1296_v21 = vpop.permute.xlu1 %1295 }
 0xf9e   :  { %v3101_v52 = vadd.f32 %v1296_v21, %v1288_v20 }
 0xfa0   :  { %2678 = vtanh.f32 %v3101_v52 }
 0xfaa   :  { %v2679_v22 = vpop.eup %2678 }
 0xfab   :  { %1301 = vrot.lane.b32.xlu1 %v2679_v22, %s2723_s19 }
0x100a   :  { %v1199_v23 = vpop.permute.xlu0 %1198 }
0x100b   :  { %v1201_v24 = vmul.f32 %v2671_v3, %v1199_v23 }
0x100d   :  { %1306 = vrot.lane.b32.xlu0 %v1201_v24, %s2724_s3 }
0x101d   :  { %v1302_v25 = vpop.permute.xlu1 %1301 }
0x101e   :  { %v3106_v26 = vmul.f32 %v2675_v11, %v1302_v25 }
0x1020   :  { %1407 = vrot.lane.b32.xlu1 %v3106_v26, %s2723_s19 }
0x107f   :  { %v1307_v28 = vpop.permute.xlu0 %1306 }
0x1080   :  { %2345 = vmatmul.mubr.msk.f32.vlgmr.msra.gmra.mrb[18].mxu0 %vm188_vm2, %v1307_v28 }
0x1081   :  { %2539 = vmatpush3.bf16.msra.mxu0 %v2844_v34  ;;  %2363 = vmatprep.mubr.msk.f32.mxu0 %vm2721_vm1, %v2722_v4 }
0x1082   :  { %2540 = vmatprep.subr.bf16.mxu0 %v2720_v0 }
0x1085   :  { %2542 = vmatpush3.bf16.msra.mxu0 %v2855_v37 }
0x1086   :  { %2543 = vmatprep.subr.bf16.mxu0 %v2720_v0 }
0x1089   :  { %2545 = vmatpush3.bf16.msra.mxu0 %v2873_v42 }
0x108a   :  { %2546 = vmatprep.subr.bf16.mxu0 %v2720_v0 }
0x108d   :  { %2548 = vmatpush3.bf16.msra.mxu0 %v2887_v46 }
0x108e   :  { %2567 = vmatprep.subr.bf16.mxu0 %v2720_v0 }
0x1092   :  { %v1408_v29 = vpop.permute.xlu1 %1407 }
0x1093   :  { %v1410_v30 = vsel %vm188_vm2, %v1307_v28, %v1408_v29 }
0x1094   :  { %2364 = vmatmul.mubr.msk.f32.vlgmr.msra.gmra.mrb[20].mxu0 %vm395_vm3, %v1410_v30 }
0x1095   :  { %2569 = vmatpush3.bf16.msra.mxu0 %v2844_v34  ;;  %2412 = vmatprep.mubr.msk.f32.mxu0 %vm2721_vm1, %v2722_v4 }
0x1096   :  { %2570 = vmatprep.subr.bf16.mxu0 %v2720_v0 }
0x1099   :  { %2572 = vmatpush3.bf16.msra.mxu0 %v2855_v37 }
0x109a   :  { %2573 = vmatprep.subr.bf16.mxu0 %v2720_v0 }
0x109d   :  { %2575 = vmatpush3.bf16.msra.mxu0 %v2873_v42 }
0x109e   :  { %2576 = vmatprep.subr.bf16.mxu0 %v2720_v0 }
0x10a1   :  { %2578 = vmatpush3.bf16.msra.mxu0 %v2887_v46 }
0x1153   :  { %v1376_v32 = vpop.f32.mrb[18].mxu0 }
0x1154   :  { %v1380_v33 = vadd.f32 %v1376_v32, %v167_v27  ;;  %v2346_v35 = vpop.f32.mrb[19].mxu0 }
0x1156   :  { %2680 = vtanh.f32 %v1380_v33  ;;  %v2010_v41 = vmul.f32 -1.442695, %v1380_v33 }
0x1160   :  { %v2681_v49 = vpop.eup %2680 }
0x1161   :  { %1390 = vrot.lane.b32.xlu0 %v2681_v49, %s2723_s19 }
0x1167   :  { %v1480_v36 = vpop.f32.mrb[20].mxu0 }
0x1168   :  { %v1481_v38 = vadd.f32 %v2925_v58, %v1480_v36  ;;  %v2365_v39 = vpop.f32.mrb[21].mxu0 }
0x116a   :  { %2682 = vtanh.f32 %v1481_v38  ;;  %v2012_v54 = vmul.f32 -1.442695, %v1481_v38 }
0x116b   :  { %2684 = vpow2.f32 %v2010_v41 }
0x1174   :  { %v2683_v40 = vpop.eup %2682 }
0x1175   :  { %1493 = vrot.lane.b32.xlu1 %v2683_v40, %s2723_s19  ;;  %v2685_v43 = vpop.eup %2684 }
0x1176   :  { %v1384_v45 = vadd.f32 1.0, %v2685_v43 }
0x1178   :  { %2686 = vrcp.f32 %v1384_v45 }
0x1179   :  { %2688 = vpow2.f32 %v2012_v54 }
0x1182   :  { %v2687_v47 = vpop.eup %2686 }
0x1183   :  { %v2689_v56 = vpop.eup %2688  ;;  %v1388_v60 = vmul.f32 %v2687_v47, %v3096_v17 }
0x1184   :  { %v1487_v50 = vadd.f32 1.0, %v2689_v56 }
0x1186   :  { %2690 = vrcp.f32 %v1487_v50 }
0x1190   :  { %v2691_v57 = vpop.eup %2690 }
0x1191   :  { %v1491_v63 = vmul.f32 %v2691_v57, %v3101_v52 }
0x11d3   :  { %v1391_v48 = vpop.permute.xlu0 %1390 }
0x11d4   :  { %v1393_v55 = vmul.f32 %v2687_v47, %v1391_v48 }
0x11d6   :  { %1395 = vrot.lane.b32.xlu0 %v1393_v55, %s2724_s3 }
0x11e7   :  { %v1494_v59 = vpop.permute.xlu1 %1493 }
0x11e8   :  { %v1496_v5 = vmul.f32 %v2691_v57, %v1494_v59 }
0x11ea   :  { %1498 = vrot.lane.b32.xlu1 %v1496_v5, %s2724_s3 }
0x1248   :  { %v1396_v61 = vpop.permute.xlu0 %1395 }
0x1249   :  { %v1398_v62 = vadd.f32 %v1396_v61, %v1388_v60 }
0x124b   :  { %2692 = vtanh.f32 %v1398_v62 }
0x1255   :  { %v2693_v10 = vpop.eup %2692 }
0x1256   :  { %1401 = vrot.lane.b32.xlu0 %v2693_v10, %s2723_s19  ;;  %v1818_v10 = vld [vmem:[%s3244_s6 + $0x8] sm:$0xff] }
0x125c   :  { %v1499_v2 = vpop.permute.xlu1 %1498 }
0x125d   :  { %v1501_v51 = vadd.f32 %v1499_v2, %v1491_v63 }
0x125f   :  { %2694 = vtanh.f32 %v1501_v51 }
0x1269   :  { %v2695_v3 = vpop.eup %2694 }
0x126a   :  { %1504 = vrot.lane.b32.xlu1 %v2695_v3, %s2723_s19 }
0x12c8   :  { %v1402_v6 = vpop.permute.xlu0 %1401 }
0x12c9   :  { %v1404_v7 = vmul.f32 %v2687_v47, %v1402_v6 }
0x12cb   :  { %1509 = vrot.lane.b32.xlu0 %v1404_v7, %s2724_s3 }
0x12dc   :  { %v1505_v8 = vpop.permute.xlu1 %1504 }
0x12dd   :  { %v3144_v9 = vmul.f32 %v2691_v57, %v1505_v8 }
0x12df   :  { %1610 = vrot.lane.b32.xlu1 %v3144_v9, %s2723_s19 }
0x133d   :  { %v1510_v11 = vpop.permute.xlu0 %1509 }
0x133e   :  { %2375 = vmatmul.mubr.msk.f32.vlgmr.msra.gmra.mrb[12].mxu1 %vm188_vm2, %v1510_v11 }
0x133f   :  { %2557 = vmatpush3.bf16.msra.mxu1 %v2844_v34  ;;  %2393 = vmatprep.mubr.msk.f32.mxu1 %vm2721_vm1, %v2722_v4  ;;  %v172_v4 = vadd.f32 %v2901_v53, %v2817_v12 }
0x1340   :  { %2558 = vmatprep.subr.bf16.mxu1 %v2720_v0 }
0x1343   :  { %2560 = vmatpush3.bf16.msra.mxu1 %v2855_v37 }
0x1344   :  { %2561 = vmatprep.subr.bf16.mxu1 %v2720_v0 }
0x1347   :  { %2563 = vmatpush3.bf16.msra.mxu1 %v2873_v42 }
0x1348   :  { %2564 = vmatprep.subr.bf16.mxu1 %v2720_v0 }
0x134b   :  { %2566 = vmatpush3.bf16.msra.mxu1 %v2887_v46 }
0x1351   :  { %v1611_v13 = vpop.permute.xlu1 %1610 }
0x1352   :  { %v1613_v14 = vsel %vm188_vm2, %v1510_v11, %v1611_v13 }
0x1353   :  { %2394 = vmatmul.mubr.msk.f32.vlgmr.msra.gmra.mrb[14].mxu1 %vm395_vm3, %v1613_v14 }
0x1411   :  { %v1579_v34 = vpop.f32.mrb[12].mxu1 }
0x1412   :  { %v1583_v15 = vadd.f32 %v1579_v34, %v172_v4  ;;  %v2376_v16 = vpop.f32.mrb[13].mxu1 }
0x1414   :  { %2696 = vtanh.f32 %v1583_v15  ;;  %v2014_v19 = vmul.f32 -1.442695, %v1583_v15  ;;  %v2019_v15 = vld [vmem:[%s3245_s7] ss:$0 sm:$0xff] }
0x141e   :  { %v2697_v37 = vpop.eup %2696 }
0x141f   :  { %1593 = vrot.lane.b32.xlu0 %v2697_v37, %s2723_s19 }
0x1426   :  { %v1683_v42 = vpop.f32.mrb[14].mxu1 }
0x1427   :  { %v1684_v0 = vadd.f32 %v2925_v58, %v1683_v42  ;;  %v2395_v17 = vpop.f32.mrb[15].mxu1 }
0x1429   :  { %2698 = vtanh.f32 %v1684_v0  ;;  %v2016_v12 = vmul.f32 -1.442695, %v1684_v0 }
0x142a   :  { %2700 = vpow2.f32 %v2014_v19 }
0x1433   :  { %v2699_v46 = vpop.eup %2698 }
0x1434   :  { %1696 = vrot.lane.b32.xlu1 %v2699_v46, %s2723_s19  ;;  %v2701_v20 = vpop.eup %2700 }
0x1435   :  { %v1587_v21 = vadd.f32 1.0, %v2701_v20 }
0x1437   :  { %2702 = vrcp.f32 %v1587_v21 }
0x1438   :  { %2704 = vpow2.f32 %v2016_v12 }
0x1441   :  { %v2703_v53 = vpop.eup %2702 }
0x1442   :  { %v2705_v23 = vpop.eup %2704  ;;  %v1591_v30 = vmul.f32 %v2703_v53, %v1398_v62 }
0x1443   :  { %v1690_v24 = vadd.f32 1.0, %v2705_v23 }
0x1445   :  { %2706 = vrcp.f32 %v1690_v24 }
0x144f   :  { %v2707_v25 = vpop.eup %2706 }
0x1450   :  { %v1694_v35 = vmul.f32 %v2707_v25, %v1501_v51 }
0x1491   :  { %v1594_v52 = vpop.permute.xlu0 %1593 }
0x1492   :  { %v1596_v22 = vmul.f32 %v2703_v53, %v1594_v52 }
0x1494   :  { %1598 = vrot.lane.b32.xlu0 %v1596_v22, %s2724_s3 }
0x14a6   :  { %v1697_v28 = vpop.permute.xlu1 %1696 }
0x14a7   :  { %v1699_v29 = vmul.f32 %v2707_v25, %v1697_v28 }
0x14a9   :  { %1701 = vrot.lane.b32.xlu1 %v1699_v29, %s2724_s3 }
0x1506   :  { %v1599_v27 = vpop.permute.xlu0 %1598 }
0x1507   :  { %v1601_v32 = vadd.f32 %v1599_v27, %v1591_v30 }
0x1509   :  { %2708 = vtanh.f32 %v1601_v32 }
0x1513   :  { %v2709_v33 = vpop.eup %2708 }
0x1514   :  { %1604 = vrot.lane.b32.xlu0 %v2709_v33, %s2723_s19 }
0x151b   :  { %v1702_v49 = vpop.permute.xlu1 %1701 }
0x151c   :  { %v1704_v36 = vadd.f32 %v1702_v49, %v1694_v35 }
0x151e   :  { %2710 = vtanh.f32 %v1704_v36 }
0x1528   :  { %v2711_v38 = vpop.eup %2710 }
0x1529   :  { %1707 = vrot.lane.b32.xlu1 %v2711_v38, %s2723_s19 }
0x1586   :  { %v1605_v39 = vpop.permute.xlu0 %1604 }
0x1587   :  { %v1607_v40 = vmul.f32 %v2703_v53, %v1605_v39 }
0x1589   :  { %1712 = vrot.lane.b32.xlu0 %v1607_v40, %s2724_s3 }
0x159b   :  { %v1708_v41 = vpop.permute.xlu1 %1707 }
0x159c   :  { %v1710_v43 = vmul.f32 %v2707_v25, %v1708_v41 }
0x159e   :  { %1716 = vrot.lane.b32.xlu1 %v1710_v43, %s2723_s19 }
0x15fb   :  { %v1713_v45 = vpop.permute.xlu0 %1712 }
0x1610   :  { %v1717_v54 = vpop.permute.xlu1 %1716 }
0x1611   :  { %v1719_v47 = vsel %vm188_vm2, %v1713_v45, %v1717_v54 }
0x1612   :  { %2413 = vmatmul.mubr.msk.f32.vlgmr.msra.gmra.mrb[22].mxu0 %vm395_vm3, %v1719_v47 }
0x16e5   :  { %v1789_v48 = vpop.f32.mrb[22].mxu0 }
0x16e6   :  { %v1790_v55 = vadd.f32 %v2925_v58, %v1789_v48  ;;  %v2414_v56 = vpop.f32.mrb[23].mxu0  ;;  %v1817_v58 = vld [vmem:[%s3244_s6] sm:$0xff] }
0x16e7   :  { %v2579_v63 = vpack.c.bf16 %v1818_v10, %v1817_v58 }
0x16e8   :  { %2712 = vtanh.f32 %v1790_v55  ;;  %v2018_v57 = vmul.f32 -1.442695, %v1790_v55 }
0x16e9   :  { %2580 = vmatprep.subr.bf16.mxu1 %v2579_v63 }
0x16ea   :  { %2714 = vpow2.f32 %v2018_v57  ;;  %2582 = vmatpush3.bf16.msra.mxu1 %v2579_v63 }
0x16f2   :  { %v2713_v50 = vpop.eup %2712 }
0x16f3   :  { %1802 = vrot.lane.b32.xlu0 %v2713_v50, %s2723_s19 }
0x16f4   :  { %v2715_v59 = vpop.eup %2714 }
0x16f5   :  { %v1796_v5 = vadd.f32 1.0, %v2715_v59 }
0x16f7   :  { %2716 = vrcp.f32 %v1796_v5 }
0x1701   :  { %v2717_v60 = vpop.eup %2716 }
0x1765   :  { %v1803_v61 = vpop.permute.xlu0 %1802 }
0x1766   :  { %v1805_v62 = vmul.f32 %v2717_v60, %v1803_v61 }
0x1768   :  { %1807 = vrot.lane.b32.xlu1 %v1805_v62, %s2724_s3 }
0x176c   :  { %1829 = vrot.lane.b32.xlu1 %v2941_v31, %s2724_s3  ;;  %v1819_v31 = vld [vmem:[%s3244_s6 + $0x10] sm:$0xff] }
0x1770   :  { %1833 = vrot.lane.b32.xlu1 %v3024_v1, %s2724_s3  ;;  %v1820_v1 = vld [vmem:[%s3244_s6 + $0x18] sm:$0xff] }
0x1771   :  { %v2583_v2 = vpack.c.bf16 %v1820_v1, %v1819_v31 }
0x1773   :  { %2584 = vmatprep.subr.bf16.mxu1 %v2583_v2 }
0x1774   :  { %1837 = vrot.lane.b32.xlu1 %v3106_v26, %s2724_s3  ;;  %v1800_v26 = vmul.f32 %v2717_v60, %v1704_v36  ;;  %2586 = vmatpush3.bf16.msra.mxu1 %v2583_v2 }
0x1778   :  { %1841 = vrot.lane.b32.xlu1 %v1710_v43, %s2724_s3 }
0x17da   :  { %v1808_v51 = vpop.permute.xlu1 %1807 }
0x17db   :  { %v1810_v3 = vadd.f32 %v1808_v51, %v1800_v26 }
0x17dd   :  { %2718 = vtanh.f32 %v1810_v3 }
0x17de   :  { %v1830_v6 = vpop.permute.xlu1 %1829 }
0x17df   :  { %2423 = vmatprep.mubr.msk.f32.mxu1 %vm188_vm2, %v1830_v6 }
0x17e2   :  { %v1834_v11 = vpop.permute.xlu1 %1833 }
0x17e6   :  { %v1838_v4 = vpop.permute.xlu1 %1837 }
0x17e7   :  { %v2719_v7 = vpop.eup %2718 }
0x17e8   :  { %1813 = vrot.lane.b32.xlu0 %v2719_v7, %s2723_s19 }
0x17ec   :  { %1831 = vrot.lane.b32.xlu0 %v2983_v18, %s2724_s3 }
0x17f0   :  { %1835 = vrot.lane.b32.xlu0 %v3065_v44, %s2724_s3  ;;  %v1842_v44 = vpop.permute.xlu1 %1841 }
0x17f4   :  { %1839 = vrot.lane.b32.xlu0 %v3144_v9, %s2724_s3 }
0x185a   :  { %v1814_v8 = vpop.permute.xlu0 %1813 }
0x185b   :  { %v1816_v13 = vmul.f32 %v2717_v60, %v1814_v8 }
0x185d   :  { %1843 = vrot.lane.b32.xlu0 %v1816_v13, %s2724_s3 }
0x185e   :  { %v1832_v14 = vpop.permute.xlu0 %1831 }
0x185f   :  { %2424 = vmatmul.mubr.msk.f32.vlgmr.msra.gmra.mrb[16].mxu1 %vm188_vm2, %v1832_v14 }
0x1860   :  { %2426 = vmatprep.mubr.msk.f32.mxu1 %vm188_vm2, %v1834_v11 }
0x1862   :  { %v1836_v34 = vpop.permute.xlu0 %1835 }
0x1863   :  { %2427 = vmatmul.mubr.msk.f32.gmra.mrb[18].mxu1 %vm188_vm2, %v1836_v34 }
0x1864   :  { %2429 = vmatprep.mubr.msk.f32.mxu1 %vm188_vm2, %v1838_v4 }
0x1866   :  { %v1840_v18 = vpop.permute.xlu0 %1839 }
0x1867   :  { %2430 = vmatmul.mubr.msk.f32.gmra.mrb[20].mxu1 %vm188_vm2, %v1840_v18 }
0x1868   :  { %2432 = vmatprep.mubr.msk.f32.mxu1 %vm188_vm2, %v1842_v44 }
0x18cf   :  { %v1844_v9 = vpop.permute.xlu0 %1843 }
0x18d0   :  { %2433 = vmatmul.mubr.msk.f32.gmra.mrb[22].mxu1 %vm188_vm2, %v1844_v9 }
0x1932   :  { %v2425_v16 = vpop.f32.mrb[16].mxu1 }
0x1933   :  { %v1933_v37 = vadd.f32 %v2425_v16, %v2019_v15  ;;  %v1927_v42 = vpop.f32.mrb[17].mxu1 }
0x1934   :  { %v1928_v0 = vadd.f32 %v2019_v15, %v1927_v42 }
0x1935   :  { %1967 = vst [vmem:[%s3246_s8 + $0x8] sm:$0xff] %v1933_v37 }
0x1936   :  { %1966 = vst [vmem:[%s3246_s8] sm:$0xff] %v1928_v0  ;;  %v2428_v17 = vpop.f32.mrb[18].mxu1 }
0x1937   :  { %v1943_v46 = vadd.f32 %v2428_v17, %v2019_v15  ;;  %v1937_v19 = vpop.f32.mrb[19].mxu1 }
0x1938   :  { %v1938_v20 = vadd.f32 %v2019_v15, %v1937_v19 }
0x1939   :  { %1969 = vst [vmem:[%s3246_s8 + $0x18] sm:$0xff] %v1943_v46 }
0x193a   :  { %1968 = vst [vmem:[%s3246_s8 + $0x10] sm:$0xff] %v1938_v20  ;;  %v2431_v21 = vpop.f32.mrb[20].mxu1 }
0x193b   :  { %v1953_v12 = vadd.f32 %v2431_v21, %v2019_v15  ;;  %v1947_v53 = vpop.f32.mrb[21].mxu1 }
0x193c   :  { %v1948_v52 = vadd.f32 %v2019_v15, %v1947_v53 }
0x193d   :  { %1971 = vst [vmem:[%s3246_s8 + $0x28] sm:$0xff] %v1953_v12 }
0x193e   :  { %1970 = vst [vmem:[%s3246_s8 + $0x20] sm:$0xff] %v1948_v52 }
0x19a3   :  { %v2434_v22 = vpop.f32.mrb[22].mxu1 }
0x19a4   :  { %v1963_v23 = vadd.f32 %v2434_v22, %v2019_v15  ;;  %v1957_v24 = vpop.f32.mrb[23].mxu1 }
0x19a5   :  { %v1958_v25 = vadd.f32 %v2019_v15, %v1957_v24 }
0x19a6   :  { %1973 = vst [vmem:[%s3246_s8 + $0x38] sm:$0xff] %v1963_v23 }
0x19a7   :  { %1972 = vst [vmem:[%s3246_s8 + $0x30] sm:$0xff] %v1958_v25 }

</bundles_post_ra>
